<compile_context>
chip_gen: v7x
topology: tpu7x:2x2x1
jax: 0.10.0
libtpu: 0.0.40
codegen_flags: <defaults>
</compile_context>

<pallas_src>
import jax
import jax.numpy as jnp
from jax.experimental import pallas as pl
from jax.experimental.pallas import tpu as pltpu

EPS = 1e-5
DROP_P = 0.5
NEG_BIG = -1e30  # bias for padded fc3 lanes -> exp() underflows to 0 in log_softmax


def net_kernel(x_ref,
               w1_ref, g1_ref, be1_ref,
               w2_ref, g2_ref, be2_ref,
               w3_ref, b3_ref,
               m1_ref, m2_ref,
               out_ref):
    inv_b = 1.0 / x_ref.shape[0]  # static batch size

    def bn_relu_drop(h, gamma, beta, mask):
        # Training-mode BatchNorm1d, single-pass stats in f32:
        #   mu = E[h], var = E[h^2] - mu^2 (biased), then one scale/shift FMA.
        mu = jnp.sum(h, axis=0, keepdims=True) * inv_b
        ex2 = jnp.sum(h * h, axis=0, keepdims=True) * inv_b
        var = ex2 - mu * mu
        scale = gamma * jax.lax.rsqrt(var + EPS)
        shift = beta - mu * scale
        h = h * scale + shift
        h = jnp.maximum(h, 0.0)
        # Dropout: mask is pre-scaled to {0, 1/(1-p)} in the wrapper.
        return h * mask.astype(jnp.float32)

    x = x_ref[...]  # bf16 (B, 784)

    # fc1 (bias dropped: cancelled by BN) -> bn1 -> relu -> dropout
    h = jnp.dot(x, w1_ref[...], preferred_element_type=jnp.float32)
    h = bn_relu_drop(h, g1_ref[...], be1_ref[...], m1_ref[...])

    # fc2 (bias dropped) -> bn2 -> relu -> dropout
    h = jnp.dot(h.astype(jnp.bfloat16), w2_ref[...],
                preferred_element_type=jnp.float32)
    h = bn_relu_drop(h, g2_ref[...], be2_ref[...], m2_ref[...])

    # fc3 (lane-padded to 128) -> log_softmax(dim=1)
    logits = jnp.dot(h.astype(jnp.bfloat16), w3_ref[...],
                     preferred_element_type=jnp.float32) + b3_ref[...]
    m = jnp.max(logits, axis=1, keepdims=True)   # pad lanes hold -1e30, never win
    z = logits - m
    lse = jnp.log(jnp.sum(jnp.exp(z), axis=1, keepdims=True))
    out_ref[...] = z - lse


def net_forward(x_nchw, params, key):
    b = x_nchw.shape[0]
    x = x_nchw.reshape(b, 28 * 28).astype(jnp.bfloat16)

    # Dropout keep-masks (training=True, p=0.5), pre-scaled to {0, 1/(1-p)}.
    # TODO(synk): derive a fresh key per training step; fixed key here is demo-only.
    k1, k2 = jax.random.split(key)
    scale = 1.0 / (1.0 - DROP_P)
    m1 = (jax.random.bernoulli(k1, 1.0 - DROP_P, (b, 512)).astype(jnp.float32)
          * scale).astype(jnp.bfloat16)
    m2 = (jax.random.bernoulli(k2, 1.0 - DROP_P, (b, 256)).astype(jnp.float32)
          * scale).astype(jnp.bfloat16)

    vmem = pl.BlockSpec(memory_space=pltpu.MemorySpace.VMEM)

    args = (x,
            params["w1"], params["g1"], params["be1"],
            params["w2"], params["g2"], params["be2"],
            params["w3"], params["b3"],
            m1, m2)

    out_padded = pl.pallas_call(
        net_kernel,
        out_shape=jax.ShapeDtypeStruct((b, 128), jnp.float32),
        in_specs=[vmem] * len(args),
        out_specs=vmem,
    )(*args)

    return out_padded[:, :10]


def init_params(key):
    # Deterministic synthetic init. Linear weights stored as (in, out) in bf16
    # (transpose of torch's (out, in)); gamma/beta/b3 kept 2-D (1, features) f32.
    # fc1/fc2 biases are intentionally omitted (BN cancels them). fc3 is padded
    # from 10 to 128 output lanes; pad columns get zero weights and -1e30 bias.
    k1, k2, k3, k4 = jax.random.split(key, 4)

    def lin_w(kw, fan_in, fan_out):
        bound = 1.0 / jnp.sqrt(fan_in)
        return jax.random.uniform(kw, (fan_in, fan_out), jnp.float32,
                                  -bound, bound)

    w1 = lin_w(k1, 28 * 28, 512).astype(jnp.bfloat16)
    w2 = lin_w(k2, 512, 256).astype(jnp.bfloat16)

    bound3 = 1.0 / jnp.sqrt(256.0)
    w3_real = lin_w(k3, 256, 10)
    b3_real = jax.random.uniform(k4, (1, 10), jnp.float32, -bound3, bound3)
    w3 = jnp.zeros((256, 128), jnp.float32).at[:, :10].set(w3_real)
    b3 = jnp.full((1, 128), NEG_BIG, jnp.float32).at[:, :10].set(b3_real)

    return {
        "w1": w1,
        "g1": jnp.ones((1, 512), jnp.float32), "be1": jnp.zeros((1, 512), jnp.float32),
        "w2": w2,
        "g2": jnp.ones((1, 256), jnp.float32), "be2": jnp.zeros((1, 256), jnp.float32),
        "w3": w3.astype(jnp.bfloat16),
        "b3": b3,
    }


if __name__ == "__main__":
    key = jax.random.PRNGKey(0)
    k_x, k_p, k_drop = jax.random.split(key, 3)

    B = 8  # small batch; BatchNorm1d(training) needs B > 1
    x = jax.random.normal(k_x, (B, 1, 28, 28), jnp.float32)  # NCHW like PyTorch
    params = init_params(k_p)

    out = net_forward(x, params, k_drop)
    out = jax.block_until_ready(out)

    assert out.shape == (B, 10) and out.dtype == jnp.float32
    # log_softmax rows must (approximately) sum to 1 in prob space
    assert jnp.allclose(jnp.sum(jnp.exp(out), axis=1), 1.0, atol=1e-3)
    assert bool(jnp.all(jnp.isfinite(out)))
    print("KERNEL_OK")
</pallas_src>

<mosaic_0001>
module attributes {stable_mosaic.version = 11 : i64} {
  func.func @net_kernel(%arg0: memref<8x784xbf16, #tpu.memory_space<vmem>>, %arg1: memref<784x512xbf16, #tpu.memory_space<vmem>>, %arg2: memref<1x512xf32, #tpu.memory_space<vmem>>, %arg3: memref<1x512xf32, #tpu.memory_space<vmem>>, %arg4: memref<512x256xbf16, #tpu.memory_space<vmem>>, %arg5: memref<1x256xf32, #tpu.memory_space<vmem>>, %arg6: memref<1x256xf32, #tpu.memory_space<vmem>>, %arg7: memref<256x128xbf16, #tpu.memory_space<vmem>>, %arg8: memref<1x128xf32, #tpu.memory_space<vmem>>, %arg9: memref<8x512xbf16, #tpu.memory_space<vmem>>, %arg10: memref<8x256xbf16, #tpu.memory_space<vmem>>, %arg11: memref<8x128xf32, #tpu.memory_space<vmem>>) attributes {dimension_semantics = [], scalar_prefetch = 0 : i64, scratch_operands = 0 : i64, tpu.core_type = #tpu.core_type<tc>} {
    %c0 = arith.constant 0 : index
    %c0_0 = arith.constant 0 : index
    %0 = vector.load %arg0[%c0, %c0_0] : memref<8x784xbf16, #tpu.memory_space<vmem>>, vector<8x784xbf16>
    %c0_1 = arith.constant 0 : index
    %c0_2 = arith.constant 0 : index
    %1 = vector.load %arg1[%c0_1, %c0_2] : memref<784x512xbf16, #tpu.memory_space<vmem>>, vector<784x512xbf16>
    %cst = arith.constant dense<0.000000e+00> : vector<8x512xf32>
    %2 = tpu.matmul %0, %1, %cst {dimension_numbers = #tpu.dot_dimension_numbers<[1], [0], [0], [1], [0, 0, 1, 1], [], []>} : vector<8x784xbf16>, vector<784x512xbf16>, vector<8x512xf32> -> vector<8x512xf32>
    %c0_3 = arith.constant 0 : index
    %c0_4 = arith.constant 0 : index
    %3 = vector.load %arg2[%c0_3, %c0_4] : memref<1x512xf32, #tpu.memory_space<vmem>>, vector<1x512xf32>
    %c0_5 = arith.constant 0 : index
    %c0_6 = arith.constant 0 : index
    %4 = vector.load %arg3[%c0_5, %c0_6] : memref<1x512xf32, #tpu.memory_space<vmem>>, vector<1x512xf32>
    %c0_7 = arith.constant 0 : index
    %c0_8 = arith.constant 0 : index
    %5 = vector.load %arg9[%c0_7, %c0_8] : memref<8x512xbf16, #tpu.memory_space<vmem>>, vector<8x512xbf16>
    %cst_9 = arith.constant dense<0.000000e+00> : vector<512xf32>
    %6 = vector.multi_reduction <add>, %2, %cst_9 [0] : vector<8x512xf32> to vector<512xf32>
    %7 = vector.shape_cast %6 : vector<512xf32> to vector<1x512xf32>
    %cst_10 = arith.constant 1.250000e-01 : f32
    %8 = vector.broadcast %cst_10 : f32 to vector<1x512xf32>
    %9 = arith.mulf %7, %8 : vector<1x512xf32>
    %10 = arith.mulf %2, %2 : vector<8x512xf32>
    %cst_11 = arith.constant dense<0.000000e+00> : vector<512xf32>
    %11 = vector.multi_reduction <add>, %10, %cst_11 [0] : vector<8x512xf32> to vector<512xf32>
    %12 = vector.shape_cast %11 : vector<512xf32> to vector<1x512xf32>
    %cst_12 = arith.constant 1.250000e-01 : f32
    %13 = vector.broadcast %cst_12 : f32 to vector<1x512xf32>
    %14 = arith.mulf %12, %13 : vector<1x512xf32>
    %15 = arith.mulf %9, %9 : vector<1x512xf32>
    %16 = arith.subf %14, %15 : vector<1x512xf32>
    %cst_13 = arith.constant 9.99999974E-6 : f32
    %17 = vector.broadcast %cst_13 : f32 to vector<1x512xf32>
    %18 = arith.addf %16, %17 : vector<1x512xf32>
    %19 = math.rsqrt %18 : vector<1x512xf32>
    %20 = arith.mulf %3, %19 : vector<1x512xf32>
    %21 = arith.mulf %9, %20 : vector<1x512xf32>
    %22 = arith.subf %4, %21 : vector<1x512xf32>
    %23 = vector.broadcast %20 : vector<1x512xf32> to vector<8x512xf32>
    %24 = arith.mulf %2, %23 : vector<8x512xf32>
    %25 = vector.broadcast %22 : vector<1x512xf32> to vector<8x512xf32>
    %26 = arith.addf %24, %25 : vector<8x512xf32>
    %cst_14 = arith.constant 0.000000e+00 : f32
    %27 = vector.broadcast %cst_14 : f32 to vector<8x512xf32>
    %28 = arith.maximumf %26, %27 : vector<8x512xf32>
    %29 = arith.extf %5 : vector<8x512xbf16> to vector<8x512xf32>
    %30 = arith.mulf %28, %29 : vector<8x512xf32>
    %31 = arith.truncf %30 : vector<8x512xf32> to vector<8x512xbf16>
    %c0_15 = arith.constant 0 : index
    %c0_16 = arith.constant 0 : index
    %32 = vector.load %arg4[%c0_15, %c0_16] : memref<512x256xbf16, #tpu.memory_space<vmem>>, vector<512x256xbf16>
    %cst_17 = arith.constant dense<0.000000e+00> : vector<8x256xf32>
    %33 = tpu.matmul %31, %32, %cst_17 {dimension_numbers = #tpu.dot_dimension_numbers<[1], [0], [0], [1], [0, 0, 1, 1], [], []>} : vector<8x512xbf16>, vector<512x256xbf16>, vector<8x256xf32> -> vector<8x256xf32>
    %c0_18 = arith.constant 0 : index
    %c0_19 = arith.constant 0 : index
    %34 = vector.load %arg5[%c0_18, %c0_19] : memref<1x256xf32, #tpu.memory_space<vmem>>, vector<1x256xf32>
    %c0_20 = arith.constant 0 : index
    %c0_21 = arith.constant 0 : index
    %35 = vector.load %arg6[%c0_20, %c0_21] : memref<1x256xf32, #tpu.memory_space<vmem>>, vector<1x256xf32>
    %c0_22 = arith.constant 0 : index
    %c0_23 = arith.constant 0 : index
    %36 = vector.load %arg10[%c0_22, %c0_23] : memref<8x256xbf16, #tpu.memory_space<vmem>>, vector<8x256xbf16>
    %cst_24 = arith.constant dense<0.000000e+00> : vector<256xf32>
    %37 = vector.multi_reduction <add>, %33, %cst_24 [0] : vector<8x256xf32> to vector<256xf32>
    %38 = vector.shape_cast %37 : vector<256xf32> to vector<1x256xf32>
    %cst_25 = arith.constant 1.250000e-01 : f32
    %39 = vector.broadcast %cst_25 : f32 to vector<1x256xf32>
    %40 = arith.mulf %38, %39 : vector<1x256xf32>
    %41 = arith.mulf %33, %33 : vector<8x256xf32>
    %cst_26 = arith.constant dense<0.000000e+00> : vector<256xf32>
    %42 = vector.multi_reduction <add>, %41, %cst_26 [0] : vector<8x256xf32> to vector<256xf32>
    %43 = vector.shape_cast %42 : vector<256xf32> to vector<1x256xf32>
    %cst_27 = arith.constant 1.250000e-01 : f32
    %44 = vector.broadcast %cst_27 : f32 to vector<1x256xf32>
    %45 = arith.mulf %43, %44 : vector<1x256xf32>
    %46 = arith.mulf %40, %40 : vector<1x256xf32>
    %47 = arith.subf %45, %46 : vector<1x256xf32>
    %cst_28 = arith.constant 9.99999974E-6 : f32
    %48 = vector.broadcast %cst_28 : f32 to vector<1x256xf32>
    %49 = arith.addf %47, %48 : vector<1x256xf32>
    %50 = math.rsqrt %49 : vector<1x256xf32>
    %51 = arith.mulf %34, %50 : vector<1x256xf32>
    %52 = arith.mulf %40, %51 : vector<1x256xf32>
    %53 = arith.subf %35, %52 : vector<1x256xf32>
    %54 = vector.broadcast %51 : vector<1x256xf32> to vector<8x256xf32>
    %55 = arith.mulf %33, %54 : vector<8x256xf32>
    %56 = vector.broadcast %53 : vector<1x256xf32> to vector<8x256xf32>
    %57 = arith.addf %55, %56 : vector<8x256xf32>
    %cst_29 = arith.constant 0.000000e+00 : f32
    %58 = vector.broadcast %cst_29 : f32 to vector<8x256xf32>
    %59 = arith.maximumf %57, %58 : vector<8x256xf32>
    %60 = arith.extf %36 : vector<8x256xbf16> to vector<8x256xf32>
    %61 = arith.mulf %59, %60 : vector<8x256xf32>
    %62 = arith.truncf %61 : vector<8x256xf32> to vector<8x256xbf16>
    %c0_30 = arith.constant 0 : index
    %c0_31 = arith.constant 0 : index
    %63 = vector.load %arg7[%c0_30, %c0_31] : memref<256x128xbf16, #tpu.memory_space<vmem>>, vector<256x128xbf16>
    %cst_32 = arith.constant dense<0.000000e+00> : vector<8x128xf32>
    %64 = tpu.matmul %62, %63, %cst_32 {dimension_numbers = #tpu.dot_dimension_numbers<[1], [0], [0], [1], [0, 0, 1, 1], [], []>} : vector<8x256xbf16>, vector<256x128xbf16>, vector<8x128xf32> -> vector<8x128xf32>
    %c0_33 = arith.constant 0 : index
    %c0_34 = arith.constant 0 : index
    %65 = vector.load %arg8[%c0_33, %c0_34] : memref<1x128xf32, #tpu.memory_space<vmem>>, vector<1x128xf32>
    %66 = vector.broadcast %65 : vector<1x128xf32> to vector<8x128xf32>
    %67 = arith.addf %64, %66 : vector<8x128xf32>
    %cst_35 = arith.constant dense<0xFF800000> : vector<8xf32>
    %68 = vector.multi_reduction <maximumf>, %67, %cst_35 [1] : vector<8x128xf32> to vector<8xf32>
    %69 = vector.shape_cast %68 : vector<8xf32> to vector<8x1xf32>
    %70 = vector.broadcast %69 : vector<8x1xf32> to vector<8x128xf32>
    %71 = arith.subf %67, %70 : vector<8x128xf32>
    %72 = math.exp %71 : vector<8x128xf32>
    %cst_36 = arith.constant dense<0.000000e+00> : vector<8xf32>
    %73 = vector.multi_reduction <add>, %72, %cst_36 [1] : vector<8x128xf32> to vector<8xf32>
    %74 = vector.shape_cast %73 : vector<8xf32> to vector<8x1xf32>
    %75 = math.log %74 : vector<8x1xf32>
    %76 = vector.broadcast %75 : vector<8x1xf32> to vector<8x128xf32>
    %77 = arith.subf %71, %76 : vector<8x128xf32>
    %c0_37 = arith.constant 0 : index
    %c0_38 = arith.constant 0 : index
    %78 = vector.load %arg11[%c0_37, %c0_38] : memref<8x128xf32, #tpu.memory_space<vmem>>, vector<8x128xf32>
    tpu.vector_store %arg11[%c0_37, %c0_38], %77 {strides = array<i32>} : memref<8x128xf32, #tpu.memory_space<vmem>>, vector<8x128xf32>,
    return
  }
}

</mosaic_0001>

<bundles_post_ra>
// kernel: tpu_custom_call.1
= control target key start
LH: loop header
LB: loop body
LE: loop exit
PB: predicated region body
PF: predicated region fallthrough
CT: control target
= control target key end

     0   :  { %16 = vsyncpa [#allocation3], 0  ;;  %s3922_s0 = inlined_call_operand.hbm [shape: bf16[8,784], index: 0, kind: input, shape index: {}]   ;;  %s3923_s1 = inlined_call_operand.hbm [shape: bf16[784,512], index: 1, kind: input, shape index: {}]   ;;  %s3924_s2 = inlined_call_operand.vmem [shape: f32[1,512], index: 2, kind: input, shape index: {}]   ;;  %s3925_s3 = inlined_call_operand.hbm [shape: f32[1,512], index: 3, kind: input, shape index: {}]   ;;  %s3926_s4 = inlined_call_operand.hbm [shape: bf16[512,256], index: 4, kind: input, shape index: {}]   ;;  %s3927_s5 = inlined_call_operand.vmem [shape: f32[1,256], index: 5, kind: input, shape index: {}]   ;;  %s3928_s6 = inlined_call_operand.hbm [shape: f32[1,256], index: 6, kind: input, shape index: {}]   ;;  %s3929_s7 = inlined_call_operand.hbm [shape: bf16[256,128], index: 7, kind: input, shape index: {}]   ;;  %s3930_s8 = inlined_call_operand.hbm [shape: f32[1,128], index: 8, kind: input, shape index: {}]   ;;  %s3931_s9 = inlined_call_operand.vmem [shape: bf16[8,512], index: 9, kind: input, shape index: {}]   ;;  %s3932_s10 = inlined_call_operand.vmem [shape: bf16[8,256], index: 10, kind: input, shape index: {}]   ;;  %s3933_s11 = inlined_call_operand.hbm [shape: f32[8,128], index: 11, kind: output, shape index: {}]  }
   0x1   :  { %17 = vsyncpa [#allocation6], 0 }
   0x2   :  { %18 = vsyncpa [#allocation9], 0 }
   0x3   :  { %19 = vsyncpa [#allocation12], 0 }
   0x4   :  { %20 = vsyncpa [#allocation4], 0  ;;  %s3621_s17 = smov [#allocation5]   ;;  %s3435_s21 = scalar_lea.hbm %s3923_s1, 25088 }
   0x5   :  { %s36_s18 = sshll.u32 %s3621_s17, 4  ;;  %p3436_p0 = scmp.ne.s32.totalorder %s3923_s1, %s3435_s21  ;;  %s37_s18 = int_to_ptr.vmem [resolvable:$true] %s36_s18 }
   0x6   :  { %p3439_p1 = scmp.lt.u32.totalorder %s3435_s21, %s3923_s1 }
   0x8   :  { %p3441_p2 = pnand %p3439_p1, %p3436_p0 }
   0xa   :  { %3444 = shalt.err (!%p3441_p2)
}
   0xb   :  { %s3445_s26 = scalar_lea.vmem %s37_s18, 25088  ;;  %p3450_p4 = scmp.lt.s32.totalorder %s37_s18, %s37_s18 }
   0xc   :  { %p3446_p3 = scmp.ne.s32.totalorder %s37_s18, %s3445_s26  ;;  %p3451_p5 = scmp.lt.s32.totalorder %s3445_s26, %s3445_s26 }
   0xe   :  { %p3452_p6 = por %p3451_p5, %p3450_p4 }
  0x10   :  { %p3453_p7 = pnand %p3452_p6, %p3446_p3 }
  0x12   :  { %3456 = shalt.err (!%p3453_p7)
}
  0x13   :  { %s3622_s27 = smov 256   ;;  %s3623_s28 = smov 16  }
  0x14   :  { %42 = dma.hbm_to_vmem [thread:$0]  %s3923_s1, 25088, %s37_s18, [#allocation6], %s3622_s27, %s3622_s27, %s3623_s28  }
  0x15   :  { %s3624_s12 = smov [#allocation8]   ;;  %s3457_s16 = scalar_lea.hbm %s3926_s4, 8192 }
  0x16   :  { %s60_s13 = sshll.u32 %s3624_s12, 4  ;;  %p3458_p8 = scmp.ne.s32.totalorder %s3926_s4, %s3457_s16  ;;  %s61_s13 = int_to_ptr.vmem [resolvable:$true] %s60_s13 }
  0x17   :  { %p3461_p9 = scmp.lt.u32.totalorder %s3457_s16, %s3926_s4 }
  0x19   :  { %p3463_p10 = pnand %p3461_p9, %p3458_p8 }
  0x1b   :  { %3466 = shalt.err (!%p3463_p10)
}
  0x1c   :  { %s3467_s22 = scalar_lea.vmem %s61_s13, 8192  ;;  %p3472_p12 = scmp.lt.s32.totalorder %s61_s13, %s61_s13 }
  0x1d   :  { %p3468_p11 = scmp.ne.s32.totalorder %s61_s13, %s3467_s22  ;;  %p3473_p13 = scmp.lt.s32.totalorder %s3467_s22, %s3467_s22 }
  0x1f   :  { %p3474_p0 = por %p3473_p13, %p3472_p12 }
  0x21   :  { %p3475_p1 = pnand %p3474_p0, %p3468_p11 }
  0x23   :  { %3478 = shalt.err (!%p3475_p1)
}
  0x24   :  { %s3625_s1 = smov 128   ;;  %s3626_s18 = smov 8  }
  0x25   :  { %66 = dma.hbm_to_vmem [thread:$0]  %s3926_s4, 8192, %s61_s13, [#allocation9], %s3625_s1, %s3625_s1, %s3626_s18  }
  0x26   :  { %s3627_s25 = smov [#allocation11]   ;;  %s3479_s29 = scalar_lea.hbm %s3929_s7, 2048 }
  0x27   :  { %s84_s26 = sshll.u32 %s3627_s25, 4  ;;  %p3480_p2 = scmp.ne.s32.totalorder %s3929_s7, %s3479_s29  ;;  %s85_s26 = int_to_ptr.vmem [resolvable:$true] %s84_s26 }
  0x28   :  { %p3483_p3 = scmp.lt.u32.totalorder %s3479_s29, %s3929_s7 }
  0x2a   :  { %p3485_p4 = pnand %p3483_p3, %p3480_p2 }
  0x2c   :  { %3488 = shalt.err (!%p3485_p4)
}
  0x2d   :  { %s3489_s16 = scalar_lea.vmem %s85_s26, 2048  ;;  %p3494_p6 = scmp.lt.s32.totalorder %s85_s26, %s85_s26 }
  0x2e   :  { %p3490_p5 = scmp.ne.s32.totalorder %s85_s26, %s3489_s16  ;;  %p3495_p7 = scmp.lt.s32.totalorder %s3489_s16, %s3489_s16 }
  0x30   :  { %p3496_p8 = por %p3495_p7, %p3494_p6 }
  0x32   :  { %p3497_p9 = pnand %p3496_p8, %p3490_p5 }
  0x34   :  { %3500 = shalt.err (!%p3497_p9)
}
  0x35   :  { %s3628_s4 = smov 64   ;;  %s3629_s13 = smov 4  }
  0x36   :  { %90 = dma.hbm_to_vmem [thread:$0]  %s3929_s7, 2048, %s85_s26, [#allocation12], %s3628_s4, %s3628_s4, %s3629_s13  }
  0x37   :  { %s3630_s20 = smov [#allocation2]   ;;  %s3631_s22 = smov [#allocation7]  }
  0x38   :  { %s27_s21 = sshll.u32 %s3630_s20, 4  ;;  %s51_s1 = sshll.u32 %s3631_s22, 4  ;;  %s28_s21 = int_to_ptr.vmem [resolvable:$true] %s27_s21  ;;  %s52_s1 = int_to_ptr.vmem [resolvable:$true] %s51_s1 }
  0x39   :  { %s3501_s24 = scalar_lea.hbm %s3922_s0, 448 }
  0x3a   :  { %p3502_p10 = scmp.ne.s32.totalorder %s3922_s0, %s3501_s24  ;;  %p3505_p11 = scmp.lt.u32.totalorder %s3501_s24, %s3922_s0 }
  0x3c   :  { %p3507_p12 = pnand %p3505_p11, %p3502_p10 }
  0x3e   :  { %3510 = shalt.err (!%p3507_p12)
}
  0x3f   :  { %s3511_s7 = scalar_lea.vmem %s28_s21, 448  ;;  %p3516_p0 = scmp.lt.s32.totalorder %s28_s21, %s28_s21 }
  0x40   :  { %p3512_p13 = scmp.ne.s32.totalorder %s28_s21, %s3511_s7  ;;  %p3517_p1 = scmp.lt.s32.totalorder %s3511_s7, %s3511_s7 }
  0x42   :  { %p3518_p2 = por %p3517_p1, %p3516_p0 }
  0x44   :  { %p3519_p3 = pnand %p3518_p2, %p3512_p13 }
  0x46   :  { %3522 = shalt.err (!%p3519_p3)
}
  0x47   :  { %30 = dma.hbm_to_vmem [thread:$0]  %s3922_s0, 448, %s28_s21, [#allocation3]  }
  0x48   :  { %s3523_s15 = scalar_lea.hbm %s3925_s3, 64 }
  0x49   :  { %p3524_p4 = scmp.ne.s32.totalorder %s3925_s3, %s3523_s15  ;;  %p3527_p5 = scmp.lt.u32.totalorder %s3523_s15, %s3925_s3 }
  0x4b   :  { %p3529_p6 = pnand %p3527_p5, %p3524_p4 }
  0x4d   :  { %3532 = shalt.err (!%p3529_p6)
}
  0x4e   :  { %s3533_s19 = scalar_lea.vmem %s52_s1, 64  ;;  %p3538_p8 = scmp.lt.s32.totalorder %s52_s1, %s52_s1 }
  0x4f   :  { %p3534_p7 = scmp.ne.s32.totalorder %s52_s1, %s3533_s19  ;;  %p3539_p9 = scmp.lt.s32.totalorder %s3533_s19, %s3533_s19 }
  0x51   :  { %p3540_p10 = por %p3539_p9, %p3538_p8 }
  0x53   :  { %p3541_p11 = pnand %p3540_p10, %p3534_p7 }
  0x55   :  { %3544 = shalt.err (!%p3541_p11)
}
  0x56   :  { %54 = dma.hbm_to_vmem [thread:$0]  %s3925_s3, 64, %s52_s1, [#allocation6]  }
  0x57   :  { %s3632_s21 = smov [#allocation10]   ;;  %s3633_s18 = smov [#allocation13]  }
  0x58   :  { %s75_s22 = sshll.u32 %s3632_s21, 4  ;;  %s97_s23 = sshll.u32 %s3633_s18, 4  ;;  %s76_s22 = int_to_ptr.vmem [resolvable:$true] %s75_s22  ;;  %s98_s23 = int_to_ptr.vmem [resolvable:$true] %s97_s23 }
  0x59   :  { %s3545_s27 = scalar_lea.hbm %s3928_s6, 32 }
  0x5a   :  { %p3546_p12 = scmp.ne.s32.totalorder %s3928_s6, %s3545_s27  ;;  %p3549_p13 = scmp.lt.u32.totalorder %s3545_s27, %s3928_s6 }
  0x5c   :  { %p3551_p0 = pnand %p3549_p13, %p3546_p12 }
  0x5e   :  { %3554 = shalt.err (!%p3551_p0)
}
  0x5f   :  { %s3555_s3 = scalar_lea.vmem %s76_s22, 32  ;;  %p3560_p2 = scmp.lt.s32.totalorder %s76_s22, %s76_s22 }
  0x60   :  { %p3556_p1 = scmp.ne.s32.totalorder %s76_s22, %s3555_s3  ;;  %p3561_p3 = scmp.lt.s32.totalorder %s3555_s3, %s3555_s3 }
  0x62   :  { %p3562_p4 = por %p3561_p3, %p3560_p2 }
  0x64   :  { %p3563_p5 = pnand %p3562_p4, %p3556_p1 }
  0x66   :  { %3566 = shalt.err (!%p3563_p5)
}
  0x67   :  { %78 = dma.hbm_to_vmem [thread:$0]  %s3928_s6, 32, %s76_s22, [#allocation9]  }
  0x68   :  { %s3567_s15 = scalar_lea.hbm %s3930_s8, 16 }
  0x69   :  { %p3568_p6 = scmp.ne.s32.totalorder %s3930_s8, %s3567_s15  ;;  %p3571_p7 = scmp.lt.u32.totalorder %s3567_s15, %s3930_s8 }
  0x6b   :  { %p3573_p8 = pnand %p3571_p7, %p3568_p6 }
  0x6d   :  { %3576 = shalt.err (!%p3573_p8)
}
  0x6e   :  { %s3577_s19 = scalar_lea.vmem %s98_s23, 16  ;;  %s3581_s0 = scalar_lea.vmem %s98_s23, 32 }
  0x6f   :  { %p3578_p9 = scmp.ne.s32.totalorder %s98_s23, %s3577_s19  ;;  %p3582_p10 = scmp.lt.s32.totalorder %s98_s23, %s98_s23 }
  0x70   :  { %p3583_p11 = scmp.lt.s32.totalorder %s3581_s0, %s3577_s19 }
  0x72   :  { %p3584_p12 = por %p3583_p11, %p3582_p10 }
  0x74   :  { %p3585_p13 = pnand %p3584_p12, %p3578_p9 }
  0x76   :  { %3588 = shalt.err (!%p3585_p13)
}
  0x77   :  { %100 = dma.hbm_to_vmem [thread:$0]  %s3930_s8, 16, %s98_s23, [#allocation12]  }
  0x78   :  { %3611 = dma.done.wait [#allocation3], 448  }
  0x79   :  { %3612 = vsyncadd [#allocation3], 4294966848 }
  0x7a   :  { %3613 = dma.done.wait [#allocation6], 25152  }
  0x7b   :  { %3614 = vsyncadd [#allocation6], 4294942144 }
  0x7c   :  { %3615 = dma.done.wait [#allocation9], 8224  }
  0x7d   :  { %3616 = vsyncadd [#allocation9], 4294959072 }
  0x7e   :  { %3617 = dma.done.wait [#allocation12], 2064  }
  0x7f   :  { %3618 = vsyncadd [#allocation12], 4294965232  ;;  %v3006_v0 = vld [vmem:[#allocation5 + $0x4] ss:$16 sps:$4 sm:$0xff]   ;;  %v3010_v2 = vld [vmem:[#allocation5] ss:$16 sps:$4 sm:$0xff]  }
  0x80   :  { %v3008_v1 = vld [vmem:[#allocation5 + $0x204] ss:$16 sps:$4 sm:$0xff]   ;;  %1335 = vmatprep.subr.bf16.mxu1 %v3006_v0  ;;  %v3011_v3 = vld [vmem:[#allocation5 + $0x200] ss:$16 sps:$4 sm:$0xff]   ;;  %vm1331_vm0 = vcmask 130048  }
  0x81   :  { %1376 = vmatprep.subr.bf16.mxu0 %v3008_v1  ;;  %v3012_v4 = vld [vmem:[#allocation5 + $0x24] ss:$16 sps:$4 sm:$0xff]   ;;  %1336 = vmatpush1.bf16.msra.mxu1 %v3010_v2  ;;  %v3016_v6 = vld [vmem:[#allocation5 + $0x20] ss:$16 sps:$4 sm:$0xff]  }
  0x82   :  { %1377 = vmatpush1.bf16.msra.mxu0 %v3011_v3  ;;  %v3014_v5 = vld [vmem:[#allocation5 + $0x224] ss:$16 sps:$4 sm:$0xff]   ;;  %1337 = vmatprep.subr.bf16.mxu1 %v3012_v4  ;;  %v3017_v7 = vld [vmem:[#allocation5 + $0x220] ss:$16 sps:$4 sm:$0xff]  }
  0x83   :  { %1378 = vmatprep.subr.bf16.mxu0 %v3014_v5  ;;  %v3018_v8 = vld [vmem:[#allocation5 + $0x44] ss:$16 sps:$4 sm:$0xff]   ;;  %v3022_v10 = vld [vmem:[#allocation5 + $0x40] ss:$16 sps:$4 sm:$0xff]   ;;  %v3111_v5 = vld [vmem:[#allocation5 + $0xc] ss:$16 sps:$4 sm:$0xff]  }
  0x84   :  { %v3020_v9 = vld [vmem:[#allocation5 + $0x244] ss:$16 sps:$4 sm:$0xff]   ;;  %v3023_v11 = vld [vmem:[#allocation5 + $0x240] ss:$16 sps:$4 sm:$0xff]  }
  0x85   :  { %1338 = vmatpush1.bf16.msra.mxu1 %v3016_v6  ;;  %v3024_v12 = vld [vmem:[#allocation5 + $0x64] ss:$16 sps:$4 sm:$0xff]   ;;  %v3028_v14 = vld [vmem:[#allocation5 + $0x60] ss:$16 sps:$4 sm:$0xff]  }
  0x86   :  { %1379 = vmatpush1.bf16.msra.mxu0 %v3017_v7  ;;  %1339 = vmatprep.subr.bf16.mxu1 %v3018_v8  ;;  %v3026_v13 = vld [vmem:[#allocation5 + $0x264] ss:$16 sps:$4 sm:$0xff]   ;;  %v3029_v15 = vld [vmem:[#allocation5 + $0x260] ss:$16 sps:$4 sm:$0xff]  }
  0x87   :  { %1380 = vmatprep.subr.bf16.mxu0 %v3020_v9  ;;  %v3030_v16 = vld [vmem:[#allocation5 + $0x84] ss:$16 sps:$4 sm:$0xff]   ;;  %v3034_v18 = vld [vmem:[#allocation5 + $0x80] ss:$16 sps:$4 sm:$0xff]   ;;  %v3109_v9 = vld [vmem:[#allocation5 + $0x8] ss:$16 sps:$4 sm:$0xff]  }
  0x88   :  { %v3032_v17 = vld [vmem:[#allocation5 + $0x284] ss:$16 sps:$4 sm:$0xff]   ;;  %v3035_v19 = vld [vmem:[#allocation5 + $0x280] ss:$16 sps:$4 sm:$0xff]  }
  0x89   :  { %1340 = vmatpush1.bf16.msra.mxu1 %v3022_v10  ;;  %v3036_v20 = vld [vmem:[#allocation5 + $0xa4] ss:$16 sps:$4 sm:$0xff]   ;;  %v3040_v22 = vld [vmem:[#allocation5 + $0xa0] ss:$16 sps:$4 sm:$0xff]  }
  0x8a   :  { %1381 = vmatpush1.bf16.msra.mxu0 %v3023_v11  ;;  %1341 = vmatprep.subr.bf16.mxu1 %v3024_v12  ;;  %v3038_v21 = vld [vmem:[#allocation5 + $0x2a4] ss:$16 sps:$4 sm:$0xff]   ;;  %v3041_v23 = vld [vmem:[#allocation5 + $0x2a0] ss:$16 sps:$4 sm:$0xff]   ;;  %v3117_v11 = vld [vmem:[#allocation5 + $0x2c] ss:$16 sps:$4 sm:$0xff]  }
  0x8b   :  { %1382 = vmatprep.subr.bf16.mxu0 %v3026_v13  ;;  %v3042_v24 = vld [vmem:[#allocation5 + $0xc4] ss:$16 sps:$4 sm:$0xff]   ;;  %v3046_v26 = vld [vmem:[#allocation5 + $0xc0] ss:$16 sps:$4 sm:$0xff]   ;;  %v3115_v13 = vld [vmem:[#allocation5 + $0x28] ss:$16 sps:$4 sm:$0xff]  }
  0x8c   :  { %v3044_v25 = vld [vmem:[#allocation5 + $0x2c4] ss:$16 sps:$4 sm:$0xff]   ;;  %v3047_v27 = vld [vmem:[#allocation5 + $0x2c0] ss:$16 sps:$4 sm:$0xff]  }
  0x8d   :  { %1342 = vmatpush1.bf16.msra.mxu1 %v3028_v14  ;;  %v3048_v28 = vld [vmem:[#allocation5 + $0xe4] ss:$16 sps:$4 sm:$0xff]   ;;  %v3052_v30 = vld [vmem:[#allocation5 + $0xe0] ss:$16 sps:$4 sm:$0xff]  }
  0x8e   :  { %1383 = vmatpush1.bf16.msra.mxu0 %v3029_v15  ;;  %1343 = vmatprep.subr.bf16.mxu1 %v3030_v16  ;;  %v3050_v29 = vld [vmem:[#allocation5 + $0x2e4] ss:$16 sps:$4 sm:$0xff]   ;;  %v3053_v31 = vld [vmem:[#allocation5 + $0x2e0] ss:$16 sps:$4 sm:$0xff]   ;;  %v3123_v15 = vld [vmem:[#allocation5 + $0x4c] ss:$16 sps:$4 sm:$0xff]  }
  0x8f   :  { %1384 = vmatprep.subr.bf16.mxu0 %v3032_v17  ;;  %v3054_v32 = vld [vmem:[#allocation5 + $0x104] ss:$16 sps:$4 sm:$0xff]   ;;  %v3058_v34 = vld [vmem:[#allocation5 + $0x100] ss:$16 sps:$4 sm:$0xff]   ;;  %v3121_v17 = vld [vmem:[#allocation5 + $0x48] ss:$16 sps:$4 sm:$0xff]  }
  0x90   :  { %v3056_v33 = vld [vmem:[#allocation5 + $0x304] ss:$16 sps:$4 sm:$0xff]   ;;  %v3059_v35 = vld [vmem:[#allocation5 + $0x300] ss:$16 sps:$4 sm:$0xff]  }
  0x91   :  { %1344 = vmatpush1.bf16.msra.mxu1 %v3034_v18  ;;  %v3060_v36 = vld [vmem:[#allocation5 + $0x124] ss:$16 sps:$4 sm:$0xff]   ;;  %v3064_v38 = vld [vmem:[#allocation5 + $0x120] ss:$16 sps:$4 sm:$0xff]  }
  0x92   :  { %1385 = vmatpush1.bf16.msra.mxu0 %v3035_v19  ;;  %1345 = vmatprep.subr.bf16.mxu1 %v3036_v20  ;;  %v3062_v37 = vld [vmem:[#allocation5 + $0x324] ss:$16 sps:$4 sm:$0xff]   ;;  %v3065_v39 = vld [vmem:[#allocation5 + $0x320] ss:$16 sps:$4 sm:$0xff]   ;;  %v3129_v19 = vld [vmem:[#allocation5 + $0x6c] ss:$16 sps:$4 sm:$0xff]  }
  0x93   :  { %1386 = vmatprep.subr.bf16.mxu0 %v3038_v21  ;;  %v3066_v40 = vld [vmem:[#allocation5 + $0x144] ss:$16 sps:$4 sm:$0xff]   ;;  %v3070_v42 = vld [vmem:[#allocation5 + $0x140] ss:$16 sps:$4 sm:$0xff]   ;;  %v3127_v21 = vld [vmem:[#allocation5 + $0x68] ss:$16 sps:$4 sm:$0xff]  }
  0x94   :  { %v3068_v41 = vld [vmem:[#allocation5 + $0x344] ss:$16 sps:$4 sm:$0xff]   ;;  %v3071_v43 = vld [vmem:[#allocation5 + $0x340] ss:$16 sps:$4 sm:$0xff]  }
  0x95   :  { %1346 = vmatpush1.bf16.msra.mxu1 %v3040_v22  ;;  %v3072_v44 = vld [vmem:[#allocation5 + $0x164] ss:$16 sps:$4 sm:$0xff]   ;;  %v128_v48 = vld [vmem:[#allocation2 + $0x8] sm:$0xff] }
  0x96   :  { %1387 = vmatpush1.bf16.msra.mxu0 %v3041_v23  ;;  %1347 = vmatprep.subr.bf16.mxu1 %v3042_v24  ;;  %v3074_v45 = vld [vmem:[#allocation5 + $0x364] ss:$16 sps:$4 sm:$0xff]   ;;  %v3076_v49 = vld [vmem:[#allocation5 + $0x160] ss:$16 sps:$4 sm:$0xff]   ;;  %v3783_v51 = vcombine.high %v128_v48, %v128_v48  ;;  %v3789_v7 = vcombine.low %v128_v48, %v128_v48  ;;  %v3135_v23 = vld [vmem:[#allocation5 + $0x8c] ss:$16 sps:$4 sm:$0xff]  }
  0x97   :  { %1388 = vmatprep.subr.bf16.mxu0 %v3044_v25  ;;  %v127_v46 = vld [vmem:[#allocation2] sm:$0xff]  ;;  %v3077_v50 = vld [vmem:[#allocation5 + $0x360] ss:$16 sps:$4 sm:$0xff]  }
  0x98   :  { %v3781_v47 = vcombine.high %v127_v46, %v127_v46  ;;  %v3078_v52 = vld [vmem:[#allocation5 + $0x184] ss:$16 sps:$4 sm:$0xff]   ;;  %1408 = vmatprep.mubr.bf16.mxu0 %v3783_v51  ;;  %v3082_v54 = vld [vmem:[#allocation5 + $0x180] ss:$16 sps:$4 sm:$0xff]   ;;  %v3787_v6 = vcombine.low %v127_v46, %v127_v46  ;;  %v3133_v25 = vld [vmem:[#allocation5 + $0x88] ss:$16 sps:$4 sm:$0xff]  }
  0x99   :  { %1348 = vmatpush1.bf16.msra.mxu1 %v3046_v26  ;;  %v3080_v53 = vld [vmem:[#allocation5 + $0x384] ss:$16 sps:$4 sm:$0xff]   ;;  %v3083_v55 = vld [vmem:[#allocation5 + $0x380] ss:$16 sps:$4 sm:$0xff]  }
  0x9a   :  { %1389 = vmatpush1.bf16.msra.mxu0 %v3047_v27  ;;  %1349 = vmatprep.subr.bf16.mxu1 %v3048_v28  ;;  %v3084_v56 = vld [vmem:[#allocation5 + $0x1a4] ss:$16 sps:$4 sm:$0xff]   ;;  %v3088_v58 = vld [vmem:[#allocation5 + $0x1a0] ss:$16 sps:$4 sm:$0xff]   ;;  %v3141_v27 = vld [vmem:[#allocation5 + $0xac] ss:$16 sps:$4 sm:$0xff]  }
  0x9b   :  { %1390 = vmatprep.subr.bf16.mxu0 %v3050_v29  ;;  %1367 = vmatprep.mubr.bf16.mxu1 %v3781_v47  ;;  %v3086_v57 = vld [vmem:[#allocation5 + $0x3a4] ss:$16 sps:$4 sm:$0xff]   ;;  %v3089_v59 = vld [vmem:[#allocation5 + $0x3a0] ss:$16 sps:$4 sm:$0xff]   ;;  %v3139_v29 = vld [vmem:[#allocation5 + $0xa8] ss:$16 sps:$4 sm:$0xff]  }
  0x9c   :  { %v3090_v60 = vld [vmem:[#allocation5 + $0x1c4] ss:$16 sps:$4 sm:$0xff]   ;;  %v3094_v62 = vld [vmem:[#allocation5 + $0x1c0] ss:$16 sps:$4 sm:$0xff]  }
  0x9d   :  { %1350 = vmatpush1.bf16.msra.mxu1 %v3052_v30  ;;  %v3092_v61 = vld [vmem:[#allocation5 + $0x3c4] ss:$16 sps:$4 sm:$0xff]   ;;  %v3095_v63 = vld [vmem:[#allocation5 + $0x3c0] ss:$16 sps:$4 sm:$0xff]  }
  0x9e   :  { %1391 = vmatpush1.bf16.msra.mxu0 %v3053_v31  ;;  %1351 = vmatprep.subr.bf16.mxu1 %v3054_v32  ;;  %v3096_v0 = vld [vmem:[#allocation5 + $0x1e4] ss:$16 sps:$4 sm:$0xff]   ;;  %v3100_v2 = vld [vmem:[#allocation5 + $0x1e0] ss:$16 sps:$4 sm:$0xff]   ;;  %v3147_v31 = vld [vmem:[#allocation5 + $0xcc] ss:$16 sps:$4 sm:$0xff]  }
  0x9f   :  { %1392 = vmatprep.subr.bf16.mxu0 %v3056_v33  ;;  %v3098_v1 = vld [vmem:[#allocation5 + $0x3e4] ss:$16 sps:$4 sm:$0xff]   ;;  %v3101_v3 = vld [vmem:[#allocation5 + $0x3e0] ss:$16 sps:$4 sm:$0xff]  }
  0xa0   :  { %v3108_v4 = vld [vmem:[#allocation5 + $0x404] ss:$16 sps:$4 sm:$0xff]   ;;  %v3106_v8 = vld [vmem:[#allocation5 + $0x400] ss:$16 sps:$4 sm:$0xff]  }
  0xa1   :  { %1352 = vmatpush1.bf16.msra.mxu1 %v3058_v34  ;;  %v3114_v10 = vld [vmem:[#allocation5 + $0x424] ss:$16 sps:$4 sm:$0xff]   ;;  %v3112_v12 = vld [vmem:[#allocation5 + $0x420] ss:$16 sps:$4 sm:$0xff]  }
  0xa2   :  { %1393 = vmatpush1.bf16.msra.mxu0 %v3059_v35  ;;  %1353 = vmatprep.subr.bf16.mxu1 %v3060_v36  ;;  %v3120_v14 = vld [vmem:[#allocation5 + $0x444] ss:$16 sps:$4 sm:$0xff]   ;;  %v3118_v16 = vld [vmem:[#allocation5 + $0x440] ss:$16 sps:$4 sm:$0xff]   ;;  %v3145_v35 = vld [vmem:[#allocation5 + $0xc8] ss:$16 sps:$4 sm:$0xff]  }
  0xa3   :  { %1394 = vmatprep.subr.bf16.mxu0 %v3062_v37  ;;  %v3126_v18 = vld [vmem:[#allocation5 + $0x464] ss:$16 sps:$4 sm:$0xff]   ;;  %v3124_v20 = vld [vmem:[#allocation5 + $0x460] ss:$16 sps:$4 sm:$0xff]   ;;  %v3153_v37 = vld [vmem:[#allocation5 + $0xec] ss:$16 sps:$4 sm:$0xff]  }
  0xa4   :  { %v3132_v22 = vld [vmem:[#allocation5 + $0x484] ss:$16 sps:$4 sm:$0xff]   ;;  %v3130_v24 = vld [vmem:[#allocation5 + $0x480] ss:$16 sps:$4 sm:$0xff]  }
  0xa5   :  { %1354 = vmatpush1.bf16.msra.mxu1 %v3064_v38  ;;  %v3138_v26 = vld [vmem:[#allocation5 + $0x4a4] ss:$16 sps:$4 sm:$0xff]   ;;  %v3136_v28 = vld [vmem:[#allocation5 + $0x4a0] ss:$16 sps:$4 sm:$0xff]  }
  0xa6   :  { %1395 = vmatpush1.bf16.msra.mxu0 %v3065_v39  ;;  %1355 = vmatprep.subr.bf16.mxu1 %v3066_v40  ;;  %v3144_v30 = vld [vmem:[#allocation5 + $0x4c4] ss:$16 sps:$4 sm:$0xff]   ;;  %v3142_v33 = vld [vmem:[#allocation5 + $0x4c0] ss:$16 sps:$4 sm:$0xff]   ;;  %v3151_v39 = vld [vmem:[#allocation5 + $0xe8] ss:$16 sps:$4 sm:$0xff]  }
  0xa7   :  { %1396 = vmatprep.subr.bf16.mxu0 %v3068_v41  ;;  %v3794_v32 = vld [vmem:[#allocation2 + $0x10] sm:$0xff]  ;;  %v3148_v38 = vld [vmem:[#allocation5 + $0x4e0] ss:$16 sps:$4 sm:$0xff]   ;;  %v3159_v41 = vld [vmem:[#allocation5 + $0x10c] ss:$16 sps:$4 sm:$0xff]  }
  0xa8   :  { %v3798_v34 = vcombine.high %v3794_v32, %v3794_v32  ;;  %v3150_v36 = vld [vmem:[#allocation5 + $0x4e4] ss:$16 sps:$4 sm:$0xff]   ;;  %v3160_v46 = vld [vmem:[#allocation5 + $0x520] ss:$16 sps:$4 sm:$0xff]  }
  0xa9   :  { %1356 = vmatpush1.bf16.msra.mxu1 %v3070_v42  ;;  %v3156_v40 = vld [vmem:[#allocation5 + $0x504] ss:$16 sps:$4 sm:$0xff]   ;;  %v3154_v42 = vld [vmem:[#allocation5 + $0x500] ss:$16 sps:$4 sm:$0xff]  }
  0xaa   :  { %1397 = vmatpush1.bf16.msra.mxu0 %v3071_v43  ;;  %1357 = vmatprep.subr.bf16.mxu1 %v3072_v44  ;;  %v3157_v43 = vld [vmem:[#allocation5 + $0x108] ss:$16 sps:$4 sm:$0xff]   ;;  %v3162_v44 = vld [vmem:[#allocation5 + $0x524] ss:$16 sps:$4 sm:$0xff]  }
  0xab   :  { %1398 = vmatprep.subr.bf16.mxu0 %v3074_v45  ;;  %v3165_v45 = vld [vmem:[#allocation5 + $0x12c] ss:$16 sps:$4 sm:$0xff]   ;;  %v3168_v48 = vld [vmem:[#allocation5 + $0x544] ss:$16 sps:$4 sm:$0xff]  }
  0xad   :  { %1358 = vmatpush1.bf16.msra.mxu1 %v3076_v49  ;;  %v3171_v49 = vld [vmem:[#allocation5 + $0x14c] ss:$16 sps:$4 sm:$0xff]  }
  0xae   :  { %1399 = vmatpush1.bf16.msra.mxu0 %v3077_v50  ;;  %1359 = vmatprep.subr.bf16.mxu1 %v3078_v52  ;;  %v3166_v50 = vld [vmem:[#allocation5 + $0x540] ss:$16 sps:$4 sm:$0xff]   ;;  %v3169_v52 = vld [vmem:[#allocation5 + $0x148] ss:$16 sps:$4 sm:$0xff]  }
  0xaf   :  { %1400 = vmatprep.subr.bf16.mxu0 %v3080_v53  ;;  %v3174_v53 = vld [vmem:[#allocation5 + $0x564] ss:$16 sps:$4 sm:$0xff]  }
  0xb1   :  { %1360 = vmatpush1.bf16.msra.mxu1 %v3082_v54  ;;  %v3177_v54 = vld [vmem:[#allocation5 + $0x16c] ss:$16 sps:$4 sm:$0xff]  }
  0xb2   :  { %1401 = vmatpush1.bf16.msra.mxu0 %v3083_v55  ;;  %1361 = vmatprep.subr.bf16.mxu1 %v3084_v56  ;;  %v3172_v55 = vld [vmem:[#allocation5 + $0x560] ss:$16 sps:$4 sm:$0xff]   ;;  %v3175_v56 = vld [vmem:[#allocation5 + $0x168] ss:$16 sps:$4 sm:$0xff]  }
  0xb3   :  { %1402 = vmatprep.subr.bf16.mxu0 %v3086_v57  ;;  %v3180_v57 = vld [vmem:[#allocation5 + $0x584] ss:$16 sps:$4 sm:$0xff]  }
  0xb5   :  { %1362 = vmatpush1.bf16.msra.mxu1 %v3088_v58  ;;  %v3183_v58 = vld [vmem:[#allocation5 + $0x18c] ss:$16 sps:$4 sm:$0xff]  }
  0xb6   :  { %1403 = vmatpush1.bf16.msra.mxu0 %v3089_v59  ;;  %1363 = vmatprep.subr.bf16.mxu1 %v3090_v60  ;;  %v3178_v59 = vld [vmem:[#allocation5 + $0x580] ss:$16 sps:$4 sm:$0xff]   ;;  %v3181_v60 = vld [vmem:[#allocation5 + $0x188] ss:$16 sps:$4 sm:$0xff]  }
  0xb7   :  { %1404 = vmatprep.subr.bf16.mxu0 %v3092_v61  ;;  %v3186_v61 = vld [vmem:[#allocation5 + $0x5a4] ss:$16 sps:$4 sm:$0xff]  }
  0xb9   :  { %1364 = vmatpush1.bf16.msra.mxu1 %v3094_v62  ;;  %v3189_v62 = vld [vmem:[#allocation5 + $0x1ac] ss:$16 sps:$4 sm:$0xff]  }
  0xba   :  { %1405 = vmatpush1.bf16.msra.mxu0 %v3095_v63  ;;  %1365 = vmatprep.subr.bf16.mxu1 %v3096_v0  ;;  %v3184_v63 = vld [vmem:[#allocation5 + $0x5a0] ss:$16 sps:$4 sm:$0xff]   ;;  %v3187_v0 = vld [vmem:[#allocation5 + $0x1a8] ss:$16 sps:$4 sm:$0xff]  }
  0xbb   :  { %1406 = vmatprep.subr.bf16.mxu0 %v3098_v1  ;;  %v3192_v1 = vld [vmem:[#allocation5 + $0x5c4] ss:$16 sps:$4 sm:$0xff]  }
  0xbd   :  { %1366 = vmatpush1.bf16.msra.mxu1 %v3100_v2  ;;  %v3195_v2 = vld [vmem:[#allocation5 + $0x1cc] ss:$16 sps:$4 sm:$0xff]  }
  0xbe   :  { %1407 = vmatpush1.bf16.msra.mxu0 %v3101_v3  ;;  %1499 = vmatprep.subr.bf16.mxu1 %v3111_v5  ;;  %v3190_v3 = vld [vmem:[#allocation5 + $0x5c0] ss:$16 sps:$4 sm:$0xff]   ;;  %v3198_v5 = vld [vmem:[#allocation5 + $0x5e4] ss:$16 sps:$4 sm:$0xff]  }
  0xbf   :  { %1417 = vmatprep.subr.bf16.mxu0 %v3108_v4  ;;  %v3193_v4 = vld [vmem:[#allocation5 + $0x1c8] ss:$16 sps:$4 sm:$0xff]  }
  0xc0   :  { %1368 = vmatmul.mubr.bf16.vlgmr.msra.gmra.mrb[0].mxu1 %v3787_v6 }
  0xc1   :  { %1409 = vmatmul.mubr.bf16.vlgmr.msra.gmra.mrb[0].mxu0 %v3789_v7  ;;  %1500 = vmatpush1.bf16.msra.mxu1 %v3109_v9  ;;  %v3196_v9 = vld [vmem:[#allocation5 + $0x5e0] ss:$16 sps:$4 sm:$0xff]  }
  0xc2   :  { %1418 = vmatpush1.bf16.msra.mxu0 %v3106_v8  ;;  %1501 = vmatprep.subr.bf16.mxu1 %v3117_v11  ;;  %v3201_v8 = vld [vmem:[#allocation5 + $0x1ec] ss:$16 sps:$4 sm:$0xff]  }
  0xc3   :  { %1419 = vmatprep.subr.bf16.mxu0 %v3114_v10  ;;  %1531 = vmatprep.mubr.bf16.mxu1 %v3781_v47  ;;  %v3163_v47 = vld [vmem:[#allocation5 + $0x128] ss:$16 sps:$4 sm:$0xff]   ;;  %v3206_v11 = vld [vmem:[#allocation5 + $0x20c] ss:$16 sps:$4 sm:$0xff]  }
  0xc4   :  { %1449 = vmatprep.mubr.bf16.mxu0 %v3798_v34  ;;  %v3199_v10 = vld [vmem:[#allocation5 + $0x1e8] ss:$16 sps:$4 sm:$0xff]  }
  0xc5   :  { %1502 = vmatpush1.bf16.msra.mxu1 %v3115_v13  ;;  %v3803_v13 = vcombine.low %v3794_v32, %v3794_v32  ;;  %v3234_v32 = vld [vmem:[#allocation5 + $0x30c] ss:$16 sps:$4 sm:$0xff]  }
  0xc6   :  { %1420 = vmatpush1.bf16.msra.mxu0 %v3112_v12  ;;  %1503 = vmatprep.subr.bf16.mxu1 %v3123_v15  ;;  %v3212_v12 = vld [vmem:[#allocation5 + $0x604] ss:$16 sps:$4 sm:$0xff]   ;;  %v3210_v15 = vld [vmem:[#allocation5 + $0x600] ss:$16 sps:$4 sm:$0xff]  }
  0xc7   :  { %1421 = vmatprep.subr.bf16.mxu0 %v3120_v14  ;;  %v3204_v14 = vld [vmem:[#allocation5 + $0x208] ss:$16 sps:$4 sm:$0xff]  }
  0xc9   :  { %1504 = vmatpush1.bf16.msra.mxu1 %v3121_v17  ;;  %v3300_v17 = vld [vmem:[#allocation5 + $0x60c] ss:$16 sps:$4 sm:$0xff]  }
  0xca   :  { %1422 = vmatpush1.bf16.msra.mxu0 %v3118_v16  ;;  %1505 = vmatprep.subr.bf16.mxu1 %v3129_v19  ;;  %v3209_v16 = vld [vmem:[#allocation5 + $0x22c] ss:$16 sps:$4 sm:$0xff]  }
  0xcb   :  { %1423 = vmatprep.subr.bf16.mxu0 %v3126_v18  ;;  %v3207_v18 = vld [vmem:[#allocation5 + $0x228] ss:$16 sps:$4 sm:$0xff]   ;;  %v3215_v19 = vld [vmem:[#allocation5 + $0x24c] ss:$16 sps:$4 sm:$0xff]  }
  0xcd   :  { %1506 = vmatpush1.bf16.msra.mxu1 %v3127_v21  ;;  %v3213_v21 = vld [vmem:[#allocation5 + $0x248] ss:$16 sps:$4 sm:$0xff]  }
  0xce   :  { %1424 = vmatpush1.bf16.msra.mxu0 %v3124_v20  ;;  %1507 = vmatprep.subr.bf16.mxu1 %v3135_v23  ;;  %v3634_v20 = vmov 0   ;;  %v3216_v23 = vld [vmem:[#allocation2 + $0x18] ss:$0 sps:$4 sm:$0xff]  }
  0xcf   :  { %1425 = vmatprep.subr.bf16.mxu0 %v3132_v22  ;;  %v3219_v22 = vld [vmem:[#allocation5 + $0x26c] ss:$16 sps:$4 sm:$0xff]  }
  0xd1   :  { %1508 = vmatpush1.bf16.msra.mxu1 %v3133_v25  ;;  %v3298_v25 = vld [vmem:[#allocation5 + $0x608] ss:$16 sps:$4 sm:$0xff]  }
  0xd2   :  { %1426 = vmatpush1.bf16.msra.mxu0 %v3130_v24  ;;  %1509 = vmatprep.subr.bf16.mxu1 %v3141_v27  ;;  %v3217_v24 = vld [vmem:[#allocation5 + $0x268] ss:$16 sps:$4 sm:$0xff]   ;;  %v3225_v27 = vld [vmem:[#allocation5 + $0x2ac] ss:$16 sps:$4 sm:$0xff]  }
  0xd3   :  { %1427 = vmatprep.subr.bf16.mxu0 %v3138_v26  ;;  %v3222_v26 = vld [vmem:[#allocation5 + $0x28c] ss:$16 sps:$4 sm:$0xff]  }
  0xd5   :  { %1510 = vmatpush1.bf16.msra.mxu1 %v3139_v29  ;;  %v3226_v29 = vld [vmem:[#allocation5 + $0x2c8] ss:$16 sps:$4 sm:$0xff]  }
  0xd6   :  { %1428 = vmatpush1.bf16.msra.mxu0 %v3136_v28  ;;  %1511 = vmatprep.subr.bf16.mxu1 %v3147_v31  ;;  %v3223_v28 = vld [vmem:[#allocation5 + $0x2a8] ss:$16 sps:$4 sm:$0xff]  }
  0xd7   :  { %1429 = vmatprep.subr.bf16.mxu0 %v3144_v30  ;;  %v3231_v30 = vld [vmem:[#allocation5 + $0x2ec] ss:$16 sps:$4 sm:$0xff]   ;;  %v3229_v31 = vld [vmem:[#allocation5 + $0x2e8] ss:$16 sps:$4 sm:$0xff]  }
  0xd9   :  { %1512 = vmatpush1.bf16.msra.mxu1 %v3145_v35  ;;  %v3237_v35 = vld [vmem:[#allocation5 + $0x32c] ss:$16 sps:$4 sm:$0xff]  }
  0xda   :  { %1430 = vmatpush1.bf16.msra.mxu0 %v3142_v33  ;;  %1513 = vmatprep.subr.bf16.mxu1 %v3153_v37  ;;  %v3232_v33 = vld [vmem:[#allocation5 + $0x308] ss:$16 sps:$4 sm:$0xff]   ;;  %v3240_v37 = vld [vmem:[#allocation5 + $0x34c] ss:$16 sps:$4 sm:$0xff]  }
  0xdb   :  { %1431 = vmatprep.subr.bf16.mxu0 %v3150_v36  ;;  %v3235_v36 = vld [vmem:[#allocation5 + $0x328] ss:$16 sps:$4 sm:$0xff]  }
  0xdd   :  { %1514 = vmatpush1.bf16.msra.mxu1 %v3151_v39  ;;  %v3243_v39 = vld [vmem:[#allocation5 + $0x36c] ss:$16 sps:$4 sm:$0xff]  }
  0xde   :  { %1432 = vmatpush1.bf16.msra.mxu0 %v3148_v38  ;;  %1515 = vmatprep.subr.bf16.mxu1 %v3159_v41  ;;  %v3238_v38 = vld [vmem:[#allocation5 + $0x348] ss:$16 sps:$4 sm:$0xff]   ;;  %v3246_v41 = vld [vmem:[#allocation5 + $0x38c] ss:$16 sps:$4 sm:$0xff]  }
  0xdf   :  { %1433 = vmatprep.subr.bf16.mxu0 %v3156_v40  ;;  %v3241_v40 = vld [vmem:[#allocation5 + $0x368] ss:$16 sps:$4 sm:$0xff]  }
  0xe1   :  { %1516 = vmatpush1.bf16.msra.mxu1 %v3157_v43  ;;  %v3249_v43 = vld [vmem:[#allocation5 + $0x3ac] ss:$16 sps:$4 sm:$0xff]  }
  0xe2   :  { %1434 = vmatpush1.bf16.msra.mxu0 %v3154_v42  ;;  %1517 = vmatprep.subr.bf16.mxu1 %v3165_v45  ;;  %v3244_v42 = vld [vmem:[#allocation5 + $0x388] ss:$16 sps:$4 sm:$0xff]   ;;  %v3252_v45 = vld [vmem:[#allocation5 + $0x3cc] ss:$16 sps:$4 sm:$0xff]  }
  0xe3   :  { %1435 = vmatprep.subr.bf16.mxu0 %v3162_v44  ;;  %v3247_v44 = vld [vmem:[#allocation5 + $0x3a8] ss:$16 sps:$4 sm:$0xff]  }
  0xe5   :  { %1518 = vmatpush1.bf16.msra.mxu1 %v3163_v47  ;;  %v3255_v47 = vld [vmem:[#allocation5 + $0x3ec] ss:$16 sps:$4 sm:$0xff]  }
  0xe6   :  { %1436 = vmatpush1.bf16.msra.mxu0 %v3160_v46  ;;  %1519 = vmatprep.subr.bf16.mxu1 %v3171_v49  ;;  %v3250_v46 = vld [vmem:[#allocation5 + $0x3c8] ss:$16 sps:$4 sm:$0xff]   ;;  %v3258_v49 = vld [vmem:[#allocation5 + $0x40c] ss:$16 sps:$4 sm:$0xff]  }
  0xe7   :  { %1437 = vmatprep.subr.bf16.mxu0 %v3168_v48  ;;  %v3253_v48 = vld [vmem:[#allocation5 + $0x3e8] ss:$16 sps:$4 sm:$0xff]  }
  0xe9   :  { %1520 = vmatpush1.bf16.msra.mxu1 %v3169_v52  ;;  %v3261_v52 = vld [vmem:[#allocation5 + $0x42c] ss:$16 sps:$4 sm:$0xff]  }
  0xea   :  { %1438 = vmatpush1.bf16.msra.mxu0 %v3166_v50  ;;  %1521 = vmatprep.subr.bf16.mxu1 %v3177_v54  ;;  %v3256_v50 = vld [vmem:[#allocation5 + $0x408] ss:$16 sps:$4 sm:$0xff]   ;;  %v3264_v54 = vld [vmem:[#allocation5 + $0x44c] ss:$16 sps:$4 sm:$0xff]  }
  0xeb   :  { %1439 = vmatprep.subr.bf16.mxu0 %v3174_v53  ;;  %v3259_v53 = vld [vmem:[#allocation5 + $0x428] ss:$16 sps:$4 sm:$0xff]  }
  0xed   :  { %1522 = vmatpush1.bf16.msra.mxu1 %v3175_v56  ;;  %v3267_v56 = vld [vmem:[#allocation5 + $0x46c] ss:$16 sps:$4 sm:$0xff]  }
  0xee   :  { %1440 = vmatpush1.bf16.msra.mxu0 %v3172_v55  ;;  %1523 = vmatprep.subr.bf16.mxu1 %v3183_v58  ;;  %v3262_v55 = vld [vmem:[#allocation5 + $0x448] ss:$16 sps:$4 sm:$0xff]   ;;  %v3270_v58 = vld [vmem:[#allocation5 + $0x48c] ss:$16 sps:$4 sm:$0xff]  }
  0xef   :  { %1441 = vmatprep.subr.bf16.mxu0 %v3180_v57  ;;  %v3265_v57 = vld [vmem:[#allocation5 + $0x468] ss:$16 sps:$4 sm:$0xff]  }
  0xf1   :  { %1524 = vmatpush1.bf16.msra.mxu1 %v3181_v60  ;;  %v3273_v60 = vld [vmem:[#allocation5 + $0x4ac] ss:$16 sps:$4 sm:$0xff]  }
  0xf2   :  { %1442 = vmatpush1.bf16.msra.mxu0 %v3178_v59  ;;  %1525 = vmatprep.subr.bf16.mxu1 %v3189_v62  ;;  %v3268_v59 = vld [vmem:[#allocation5 + $0x488] ss:$16 sps:$4 sm:$0xff]   ;;  %v3279_v62 = vld [vmem:[#allocation5 + $0x4ec] ss:$16 sps:$4 sm:$0xff]  }
  0xf3   :  { %1443 = vmatprep.subr.bf16.mxu0 %v3186_v61  ;;  %v3276_v61 = vld [vmem:[#allocation5 + $0x4cc] ss:$16 sps:$4 sm:$0xff]  }
  0xf5   :  { %1526 = vmatpush1.bf16.msra.mxu1 %v3187_v0  ;;  %v3282_v0 = vld [vmem:[#allocation5 + $0x50c] ss:$16 sps:$4 sm:$0xff]  }
  0xf6   :  { %1444 = vmatpush1.bf16.msra.mxu0 %v3184_v63  ;;  %1527 = vmatprep.subr.bf16.mxu1 %v3195_v2  ;;  %v3277_v63 = vld [vmem:[#allocation5 + $0x4e8] ss:$16 sps:$4 sm:$0xff]   ;;  %v3285_v2 = vld [vmem:[#allocation5 + $0x52c] ss:$16 sps:$4 sm:$0xff]  }
  0xf7   :  { %1445 = vmatprep.subr.bf16.mxu0 %v3192_v1  ;;  %v3280_v1 = vld [vmem:[#allocation5 + $0x508] ss:$16 sps:$4 sm:$0xff]  }
  0xf9   :  { %1528 = vmatpush1.bf16.msra.mxu1 %v3193_v4  ;;  %v3288_v4 = vld [vmem:[#allocation5 + $0x54c] ss:$16 sps:$4 sm:$0xff]  }
  0xfa   :  { %1446 = vmatpush1.bf16.msra.mxu0 %v3190_v3  ;;  %1529 = vmatprep.subr.bf16.mxu1 %v3201_v8  ;;  %v3283_v3 = vld [vmem:[#allocation5 + $0x528] ss:$16 sps:$4 sm:$0xff]   ;;  %v3291_v8 = vld [vmem:[#allocation5 + $0x56c] ss:$16 sps:$4 sm:$0xff]  }
  0xfb   :  { %1447 = vmatprep.subr.bf16.mxu0 %v3198_v5  ;;  %v3286_v5 = vld [vmem:[#allocation5 + $0x548] ss:$16 sps:$4 sm:$0xff]  }
  0xfd   :  { %1530 = vmatpush1.bf16.msra.mxu1 %v3199_v10  ;;  %v3294_v10 = vld [vmem:[#allocation5 + $0x58c] ss:$16 sps:$4 sm:$0xff]  }
  0xfe   :  { %1448 = vmatpush1.bf16.msra.mxu0 %v3196_v9  ;;  %1540 = vmatprep.subr.bf16.mxu1 %v3206_v11  ;;  %v3289_v9 = vld [vmem:[#allocation5 + $0x568] ss:$16 sps:$4 sm:$0xff]  }
  0xff   :  { %1458 = vmatprep.subr.bf16.mxu0 %v3212_v12  ;;  %v3292_v11 = vld [vmem:[#allocation5 + $0x588] ss:$16 sps:$4 sm:$0xff]   ;;  %v3297_v12 = vld [vmem:[#allocation5 + $0x5ac] ss:$16 sps:$4 sm:$0xff]  }
 0x100   :  { %1532 = vmatmul.mubr.bf16.vlgmr.msra.gmra.mrb[4].mxu1 %v3787_v6  ;;  %v3220_v6 = vld [vmem:[#allocation5 + $0x288] ss:$16 sps:$4 sm:$0xff]  }
 0x101   :  { %1450 = vmatmul.mubr.bf16.vlgmr.msra.gmra.mrb[0].mxu0 %v3803_v13  ;;  %1541 = vmatpush1.bf16.msra.mxu1 %v3204_v14  ;;  %v3295_v14 = vld [vmem:[#allocation5 + $0x5a8] ss:$16 sps:$4 sm:$0xff]  }
 0x102   :  { %1459 = vmatpush1.bf16.msra.mxu0 %v3210_v15  ;;  %1542 = vmatprep.subr.bf16.mxu1 %v3209_v16  ;;  %v3303_v15 = vld [vmem:[#allocation5 + $0x5cc] ss:$16 sps:$4 sm:$0xff]   ;;  %v3301_v16 = vld [vmem:[#allocation5 + $0x5c8] ss:$16 sps:$4 sm:$0xff]  }
 0x103   :  { %1490 = vmatprep.mubr.bf16.mxu0 %v3634_v20  ;;  %1572 = vmatprep.mubr.bf16.mxu1 %v3783_v51  ;;  %v3228_v51 = vld [vmem:[#allocation5 + $0x2cc] ss:$16 sps:$4 sm:$0xff]  }
 0x104   :  { %1622 = vmatprep.subr.bf16.mxu0 %v3300_v17  ;;  %v3306_v17 = vld [vmem:[#allocation5 + $0x5ec] ss:$16 sps:$4 sm:$0xff]  }
 0x105   :  { %1543 = vmatpush1.bf16.msra.mxu1 %v3207_v18  ;;  %v3304_v18 = vld [vmem:[#allocation5 + $0x5e8] ss:$16 sps:$4 sm:$0xff]  }
 0x106   :  { %1544 = vmatprep.subr.bf16.mxu1 %v3215_v19 }
 0x109   :  { %1545 = vmatpush1.bf16.msra.mxu1 %v3213_v21 }
 0x10a   :  { %1546 = vmatprep.subr.bf16.mxu1 %v3219_v22 }
 0x10d   :  { %2861 = vmatmul.mubr.msk.bf16.vlgmr.msra.gmra.mrb[0].mxu0 %vm1331_vm0, %v3216_v23  ;;  %1547 = vmatpush1.bf16.msra.mxu1 %v3217_v24  ;;  %v3307_v24 = vld [vmem:[#allocation8] ss:$8 sps:$4 sm:$0xff]  }
 0x10e   :  { %1623 = vmatpush1.bf16.msra.mxu0 %v3298_v25  ;;  %1548 = vmatprep.subr.bf16.mxu1 %v3222_v26  ;;  %v3312_v25 = vld [vmem:[#allocation8 + $0x14] ss:$8 sps:$4 sm:$0xff]   ;;  %v3310_v26 = vld [vmem:[#allocation8 + $0x10] ss:$8 sps:$4 sm:$0xff]  }
 0x10f   :  { %1654 = vmatprep.mubr.bf16.mxu0 %v3634_v20 }
 0x111   :  { %1549 = vmatpush1.bf16.msra.mxu1 %v3220_v6  ;;  %v3315_v6 = vld [vmem:[#allocation8 + $0x24] ss:$8 sps:$4 sm:$0xff]  }
 0x112   :  { %1550 = vmatprep.subr.bf16.mxu1 %v3225_v27 }
 0x115   :  { %2862 = vmatmul.mubr.msk.bf16.vlgmr.msra.gmra.mrb[4].mxu0 %vm1331_vm0, %v3216_v23  ;;  %1551 = vmatpush1.bf16.msra.mxu1 %v3223_v28  ;;  %v3309_v23 = vld [vmem:[#allocation8 + $0x4] ss:$8 sps:$4 sm:$0xff]   ;;  %v3313_v28 = vld [vmem:[#allocation8 + $0x20] ss:$8 sps:$4 sm:$0xff]  }
 0x116   :  { %1552 = vmatprep.subr.bf16.mxu1 %v3228_v51  ;;  %2257 = vmatprep.subr.bf16.mxu0 %v3309_v23  ;;  %v3336_v23 = vld [vmem:[#allocation8 + $0x94] ss:$8 sps:$4 sm:$0xff]  }
 0x117   :  { %2258 = vmatpush1.bf16.msra.mxu0 %v3307_v24  ;;  %v3334_v24 = vld [vmem:[#allocation8 + $0x90] ss:$8 sps:$4 sm:$0xff]  }
 0x118   :  { %2259 = vmatprep.subr.bf16.mxu0 %v3312_v25  ;;  %v3339_v25 = vld [vmem:[#allocation8 + $0xa4] ss:$8 sps:$4 sm:$0xff]  }
 0x119   :  { %1553 = vmatpush1.bf16.msra.mxu1 %v3226_v29 }
 0x11a   :  { %1554 = vmatprep.subr.bf16.mxu1 %v3231_v30 }
 0x11b   :  { %2260 = vmatpush1.bf16.msra.mxu0 %v3310_v26  ;;  %v3337_v26 = vld [vmem:[#allocation8 + $0xa0] ss:$8 sps:$4 sm:$0xff]  }
 0x11c   :  { %2261 = vmatprep.subr.bf16.mxu0 %v3315_v6 }
 0x11d   :  { %1555 = vmatpush1.bf16.msra.mxu1 %v3229_v31 }
 0x11e   :  { %1556 = vmatprep.subr.bf16.mxu1 %v3234_v32 }
 0x11f   :  { %2262 = vmatpush1.bf16.msra.mxu0 %v3313_v28 }
 0x121   :  { %1557 = vmatpush1.bf16.msra.mxu1 %v3232_v33 }
 0x122   :  { %1558 = vmatprep.subr.bf16.mxu1 %v3237_v35  ;;  %v3318_v35 = vld [vmem:[#allocation8 + $0x34] ss:$8 sps:$4 sm:$0xff]  }
 0x123   :  { %2263 = vmatprep.subr.bf16.mxu0 %v3318_v35  ;;  %v3346_v35 = vld [vmem:[#allocation8 + $0xd0] ss:$8 sps:$4 sm:$0xff]  }
 0x125   :  { %1559 = vmatpush1.bf16.msra.mxu1 %v3235_v36 }
 0x126   :  { %1560 = vmatprep.subr.bf16.mxu1 %v3240_v37 }
 0x129   :  { %1561 = vmatpush1.bf16.msra.mxu1 %v3238_v38  ;;  %v3316_v38 = vld [vmem:[#allocation8 + $0x30] ss:$8 sps:$4 sm:$0xff]  }
 0x12a   :  { %1562 = vmatprep.subr.bf16.mxu1 %v3243_v39  ;;  %2264 = vmatpush1.bf16.msra.mxu0 %v3316_v38  ;;  %v3354_v38 = vld [vmem:[#allocation8 + $0xf4] ss:$8 sps:$4 sm:$0xff]  }
 0x12d   :  { %1563 = vmatpush1.bf16.msra.mxu1 %v3241_v40 }
 0x12e   :  { %1564 = vmatprep.subr.bf16.mxu1 %v3246_v41 }
 0x131   :  { %1565 = vmatpush1.bf16.msra.mxu1 %v3244_v42 }
 0x132   :  { %1566 = vmatprep.subr.bf16.mxu1 %v3249_v43 }
 0x135   :  { %1567 = vmatpush1.bf16.msra.mxu1 %v3247_v44 }
 0x136   :  { %1568 = vmatprep.subr.bf16.mxu1 %v3252_v45  ;;  %v3321_v45 = vld [vmem:[#allocation8 + $0x44] ss:$8 sps:$4 sm:$0xff]  }
 0x137   :  { %2265 = vmatprep.subr.bf16.mxu0 %v3321_v45 }
 0x139   :  { %1569 = vmatpush1.bf16.msra.mxu1 %v3250_v46 }
 0x13a   :  { %1570 = vmatprep.subr.bf16.mxu1 %v3255_v47 }
 0x13d   :  { %1571 = vmatpush1.bf16.msra.mxu1 %v3253_v48 }
 0x13e   :  { %1581 = vmatprep.subr.bf16.mxu1 %v3258_v49  ;;  %v3319_v49 = vld [vmem:[#allocation8 + $0x40] ss:$8 sps:$4 sm:$0xff]  }
 0x13f   :  { %2266 = vmatpush1.bf16.msra.mxu0 %v3319_v49 }
 0x140   :  { %1573 = vmatmul.mubr.bf16.vlgmr.msra.gmra.mrb[4].mxu1 %v3789_v7  ;;  %v3271_v7 = vld [vmem:[#allocation5 + $0x4a8] ss:$16 sps:$4 sm:$0xff]  }
 0x141   :  { %1582 = vmatpush1.bf16.msra.mxu1 %v3256_v50  ;;  %1613 = vmatprep.mubr.bf16.mxu1 %v3798_v34  ;;  %v3274_v34 = vld [vmem:[#allocation5 + $0x4c8] ss:$16 sps:$4 sm:$0xff]  }
 0x142   :  { %1583 = vmatprep.subr.bf16.mxu1 %v3261_v52 }
 0x145   :  { %1584 = vmatpush1.bf16.msra.mxu1 %v3259_v53 }
 0x146   :  { %1585 = vmatprep.subr.bf16.mxu1 %v3264_v54 }
 0x149   :  { %1586 = vmatpush1.bf16.msra.mxu1 %v3262_v55 }
 0x14a   :  { %1587 = vmatprep.subr.bf16.mxu1 %v3267_v56 }
 0x14d   :  { %1588 = vmatpush1.bf16.msra.mxu1 %v3265_v57 }
 0x14e   :  { %1589 = vmatprep.subr.bf16.mxu1 %v3270_v58 }
 0x151   :  { %1590 = vmatpush1.bf16.msra.mxu1 %v3268_v59 }
 0x152   :  { %1591 = vmatprep.subr.bf16.mxu1 %v3273_v60  ;;  %v3324_v60 = vld [vmem:[#allocation8 + $0x54] ss:$8 sps:$4 sm:$0xff]  }
 0x153   :  { %2267 = vmatprep.subr.bf16.mxu0 %v3324_v60 }
 0x155   :  { %1592 = vmatpush1.bf16.msra.mxu1 %v3271_v7 }
 0x156   :  { %1593 = vmatprep.subr.bf16.mxu1 %v3276_v61 }
 0x159   :  { %1594 = vmatpush1.bf16.msra.mxu1 %v3274_v34  ;;  %v3322_v34 = vld [vmem:[#allocation8 + $0x50] ss:$8 sps:$4 sm:$0xff]  }
 0x15a   :  { %1595 = vmatprep.subr.bf16.mxu1 %v3279_v62  ;;  %2268 = vmatpush1.bf16.msra.mxu0 %v3322_v34 }
 0x15d   :  { %1596 = vmatpush1.bf16.msra.mxu1 %v3277_v63 }
 0x15e   :  { %1597 = vmatprep.subr.bf16.mxu1 %v3282_v0 }
 0x161   :  { %1598 = vmatpush1.bf16.msra.mxu1 %v3280_v1 }
 0x162   :  { %1599 = vmatprep.subr.bf16.mxu1 %v3285_v2 }
 0x165   :  { %1600 = vmatpush1.bf16.msra.mxu1 %v3283_v3 }
 0x166   :  { %1601 = vmatprep.subr.bf16.mxu1 %v3288_v4  ;;  %v3327_v4 = vld [vmem:[#allocation8 + $0x64] ss:$8 sps:$4 sm:$0xff]  }
 0x167   :  { %2269 = vmatprep.subr.bf16.mxu0 %v3327_v4 }
 0x169   :  { %1602 = vmatpush1.bf16.msra.mxu1 %v3286_v5 }
 0x16a   :  { %1603 = vmatprep.subr.bf16.mxu1 %v3291_v8 }
 0x16d   :  { %1604 = vmatpush1.bf16.msra.mxu1 %v3289_v9  ;;  %v3325_v9 = vld [vmem:[#allocation8 + $0x60] ss:$8 sps:$4 sm:$0xff]  }
 0x16e   :  { %1605 = vmatprep.subr.bf16.mxu1 %v3294_v10  ;;  %2270 = vmatpush1.bf16.msra.mxu0 %v3325_v9 }
 0x171   :  { %1606 = vmatpush1.bf16.msra.mxu1 %v3292_v11 }
 0x172   :  { %1607 = vmatprep.subr.bf16.mxu1 %v3297_v12 }
 0x175   :  { %1608 = vmatpush1.bf16.msra.mxu1 %v3295_v14 }
 0x176   :  { %1609 = vmatprep.subr.bf16.mxu1 %v3303_v15 }
 0x179   :  { %1610 = vmatpush1.bf16.msra.mxu1 %v3301_v16  ;;  %v3330_v16 = vld [vmem:[#allocation8 + $0x74] ss:$8 sps:$4 sm:$0xff]  }
 0x17a   :  { %1611 = vmatprep.subr.bf16.mxu1 %v3306_v17  ;;  %2271 = vmatprep.subr.bf16.mxu0 %v3330_v16 }
 0x17d   :  { %1612 = vmatpush1.bf16.msra.mxu1 %v3304_v18  ;;  %v3328_v18 = vld [vmem:[#allocation8 + $0x70] ss:$8 sps:$4 sm:$0xff]  }
 0x17e   :  { %2272 = vmatpush1.bf16.msra.mxu0 %v3328_v18 }
 0x180   :  { %1614 = vmatmul.mubr.bf16.vlgmr.msra.gmra.mrb[4].mxu1 %v3803_v13 }
 0x193   :  { %v1369_v19 = vpop.f32.mrb[0].mxu1 }
 0x194   :  { %v1371_v20 = vpop.f32.mrb[1].mxu1 }
 0x195   :  { %v1373_v21 = vpop.f32.mrb[2].mxu1 }
 0x196   :  { %v1374_v22 = vpop.f32.mrb[3].mxu1  ;;  %v3333_v21 = vld [vmem:[#allocation8 + $0x84] ss:$8 sps:$4 sm:$0xff]  }
 0x197   :  { %v3331_v22 = vld [vmem:[#allocation8 + $0x80] ss:$8 sps:$4 sm:$0xff]   ;;  %2273 = vmatprep.subr.bf16.mxu0 %v3333_v21 }
 0x198   :  { %2274 = vmatpush1.bf16.msra.mxu0 %v3331_v22 }
 0x199   :  { %2275 = vmatprep.subr.bf16.mxu0 %v3336_v23  ;;  %v3635_v23 = vmov 1966171168  }
 0x19c   :  { %2276 = vmatpush1.bf16.msra.mxu0 %v3334_v24  ;;  %v1750_v24 = vunpack.c.l.s4 %v3635_v23  ;;  %v3363_v23 = vld [vmem:[#allocation8 + $0x124] ss:$8 sps:$4 sm:$0xff]  }
 0x19d   :  { %2277 = vmatprep.subr.bf16.mxu0 %v3339_v25  ;;  %v1752_v25 = vlaneseq }
 0x1a0   :  { %2278 = vmatpush1.bf16.msra.mxu0 %v3337_v26  ;;  %v1751_v26 = vunpack.c.0.s8 %v1750_v24  ;;  %v3361_v24 = vld [vmem:[#allocation8 + $0x120] ss:$8 sps:$4 sm:$0xff]  }
 0x1e0   :  { %v1492_v27 = vpop.f32.mrb[0].mxu0 }
 0x1e1   :  { %v3811_v51 = vadd.f32 %v1492_v27, %v1369_v19  ;;  %v1494_v29 = vpop.f32.mrb[1].mxu0 }
 0x1e2   :  { %v3813_v13 = vadd.f32 %v1494_v29, %v1371_v20  ;;  %v1496_v30 = vpop.f32.mrb[2].mxu0  ;;  %v3342_v29 = vld [vmem:[#allocation8 + $0xb4] ss:$8 sps:$4 sm:$0xff]  }
 0x1e3   :  { %v1667_v31 = vrot.slane %v3811_v51, 4  ;;  %v1695_v32 = vmul.f32 %v3811_v51, %v3811_v51  ;;  %v1497_v33 = vpop.f32.mrb[3].mxu0  ;;  %v3340_v30 = vld [vmem:[#allocation8 + $0xb0] ss:$8 sps:$4 sm:$0xff]   ;;  %2279 = vmatprep.subr.bf16.mxu0 %v3342_v29  ;;  %v1753_v29 = vshrl.u32 %v1752_v25, 7 }
 0x1e4   :  { %v1673_v36 = vrot.slane %v3813_v13, 4  ;;  %v1696_v37 = vmul.f32 %v3813_v13, %v3813_v13  ;;  %2280 = vmatpush1.bf16.msra.mxu0 %v3340_v30  ;;  %v3348_v33 = vld [vmem:[#allocation8 + $0xd4] ss:$8 sps:$4 sm:$0xff]  }
 0x1e5   :  { %v1668_v39 = vadd.f32 %v3811_v51, %v1667_v31  ;;  %v1699_v40 = vrot.slane %v1695_v32, 4  ;;  %v3343_v31 = vld [vmem:[#allocation8 + $0xc0] ss:$8 sps:$4 sm:$0xff]   ;;  %v3366_v25 = vld [vmem:[#allocation8 + $0x134] ss:$8 sps:$4 sm:$0xff]  }
 0x1e6   :  { %v1674_v41 = vadd.f32 %v3813_v13, %v1673_v36  ;;  %v1705_v42 = vrot.slane %v1696_v37, 4  ;;  %v3351_v36 = vld [vmem:[#allocation8 + $0xe4] ss:$8 sps:$4 sm:$0xff]  }
 0x1e7   :  { %v1669_v43 = vrot.slane %v1668_v39, 2  ;;  %v1700_v44 = vadd.f32 %v1699_v40, %v1695_v32  ;;  %v3345_v32 = vld [vmem:[#allocation8 + $0xc4] ss:$8 sps:$4 sm:$0xff]  }
 0x1e8   :  { %v1675_v46 = vrot.slane %v1674_v41, 2  ;;  %v1706_v47 = vadd.f32 %v1705_v42, %v1696_v37  ;;  %v3823_v48 = vpop.f32.mrb[4].mxu0  ;;  %2281 = vmatprep.subr.bf16.mxu0 %v3345_v32  ;;  %v3349_v37 = vld [vmem:[#allocation8 + $0xe0] ss:$8 sps:$4 sm:$0xff]   ;;  %v3357_v40 = vld [vmem:[#allocation8 + $0x104] ss:$8 sps:$4 sm:$0xff]  }
 0x1e9   :  { %v1670_v50 = vadd.f32 %v1669_v43, %v1668_v39  ;;  %v1701_v52 = vrot.slane %v1700_v44, 2  ;;  %v3825_v53 = vpop.f32.mrb[5].mxu0  ;;  %2282 = vmatpush1.bf16.msra.mxu0 %v3343_v31  ;;  %v3352_v39 = vld [vmem:[#allocation8 + $0xf0] ss:$8 sps:$4 sm:$0xff]   ;;  %v3855_v31 = vsub.s32 %v1751_v26, %v1753_v29 }
 0x1ea   :  { %v1676_v54 = vadd.f32 %v1675_v46, %v1674_v41  ;;  %v1707_v55 = vrot.slane %v1706_v47, 2  ;;  %v1660_v56 = vpop.f32.mrb[6].mxu0  ;;  %2283 = vmatprep.subr.bf16.mxu0 %v3348_v33  ;;  %v3364_v26 = vld [vmem:[#allocation8 + $0x130] ss:$8 sps:$4 sm:$0xff]  }
 0x1eb   :  { %v1671_v57 = vrot.slane %v1670_v50, 1  ;;  %v1702_v58 = vadd.f32 %v1701_v52, %v1700_v44  ;;  %v1661_v59 = vpop.f32.mrb[7].mxu0 }
 0x1ec   :  { %v1677_v7 = vrot.slane %v1676_v54, 1  ;;  %v1708_v61 = vadd.f32 %v1707_v55, %v1706_v47 }
 0x1ed   :  { %v1672_v62 = vadd.f32 %v1671_v57, %v1670_v50  ;;  %v1703_v63 = vrot.slane %v1702_v58, 1  ;;  %2284 = vmatpush1.bf16.msra.mxu0 %v3346_v35 }
 0x1ee   :  { %v1678_v0 = vadd.f32 %v1677_v7, %v1676_v54  ;;  %v1709_v1 = vrot.slane %v1708_v61, 1  ;;  %2285 = vmatprep.subr.bf16.mxu0 %v3351_v36 }
 0x1ef   :  { %v3827_v2 = vmul.f32 0.125, %v1672_v62  ;;  %v1704_v3 = vadd.f32 %v1703_v63, %v1702_v58 }
 0x1f0   :  { %v3829_v5 = vmul.f32 0.125, %v1678_v0  ;;  %v1710_v8 = vadd.f32 %v1709_v1, %v1708_v61 }
 0x1f1   :  { %v1723_v10 = vmul.f32 0.125, %v1704_v3  ;;  %v1727_v11 = vmul.f32 %v3827_v2, %v3827_v2  ;;  %2286 = vmatpush1.bf16.msra.mxu0 %v3349_v37 }
 0x1f2   :  { %v1724_v12 = vmul.f32 0.125, %v1710_v8  ;;  %v1728_v14 = vmul.f32 %v3829_v5, %v3829_v5  ;;  %2287 = vmatprep.subr.bf16.mxu0 %v3354_v38  ;;  %v1663_v38 = vld [vmem:[%s3924_s2] sm:$0xf] }
 0x1f3   :  { %v1731_v15 = vsub.f32 %v1723_v10, %v1727_v11 }
 0x1f4   :  { %v1732_v17 = vsub.f32 %v1724_v12, %v1728_v14 }
 0x1f5   :  { %v1735_v19 = vadd.f32 1e-05, %v1731_v15  ;;  %2288 = vmatpush1.bf16.msra.mxu0 %v3352_v39  ;;  %v1784_v39 = vsub.s32 2, %v1753_v29 }
 0x1f6   :  { %v1736_v20 = vadd.f32 1e-05, %v1732_v17  ;;  %2298 = vmatprep.subr.bf16.mxu0 %v3357_v40 }
 0x1f7   :  { %3419 = vrsqrt.f32 %v1735_v19 }
 0x1f8   :  { %3421 = vrsqrt.f32 %v1736_v20 }
 0x201   :  { %v3835_v6 = vpop.eup %3419 }
 0x202   :  { %v3837_v27 = vpop.eup %3421 }
 0x203   :  { %v1747_v28 = vcombine.low %v3835_v6, %v3837_v27 }
 0x205   :  { %v1755_v35 = vrot.slane %v1747_v28, %v3855_v31 }
 0x253   :  { %v1615_v41 = vpop.f32.mrb[4].mxu1 }
 0x254   :  { %v3842_v42 = vadd.f32 %v3823_v48, %v1615_v41  ;;  %v1617_v43 = vpop.f32.mrb[5].mxu1  ;;  %v1788_v41 = vsub.s32 3, %v1753_v29 }
 0x255   :  { %v3845_v44 = vadd.f32 %v3825_v53, %v1617_v43  ;;  %v1619_v45 = vpop.f32.mrb[6].mxu1  ;;  %v3866_v43 = vsub.s32 0, %v1753_v29 }
 0x256   :  { %v1679_v46 = vrot.slane %v3842_v42, 4  ;;  %v1697_v47 = vmul.f32 %v3842_v42, %v3842_v42  ;;  %v1620_v49 = vpop.f32.mrb[7].mxu1  ;;  %v3868_v45 = vsub.s32 1, %v1753_v29  ;;  %v3369_v29 = vld [vmem:[#allocation8 + $0x144] ss:$8 sps:$4 sm:$0xff]  }
 0x257   :  { %v1685_v50 = vrot.slane %v3845_v44, 4  ;;  %v1698_v52 = vmul.f32 %v3845_v44, %v3845_v44 }
 0x258   :  { %v1680_v54 = vadd.f32 %v3842_v42, %v1679_v46  ;;  %v1711_v48 = vrot.slane %v1697_v47, 4 }
 0x259   :  { %v1686_v55 = vadd.f32 %v3845_v44, %v1685_v50  ;;  %v1717_v56 = vrot.slane %v1698_v52, 4 }
 0x25a   :  { %v1681_v53 = vrot.slane %v1680_v54, 2  ;;  %v1712_v57 = vadd.f32 %v1711_v48, %v1697_v47 }
 0x25b   :  { %v1687_v58 = vrot.slane %v1686_v55, 2  ;;  %v1718_v59 = vadd.f32 %v1717_v56, %v1698_v52 }
 0x25c   :  { %v1682_v60 = vadd.f32 %v1681_v53, %v1680_v54  ;;  %v1713_v7 = vrot.slane %v1712_v57, 2 }
 0x25d   :  { %v1688_v61 = vadd.f32 %v1687_v58, %v1686_v55  ;;  %v1719_v34 = vrot.slane %v1718_v59, 2 }
 0x25e   :  { %v1683_v62 = vrot.slane %v1682_v60, 1  ;;  %v1714_v63 = vadd.f32 %v1713_v7, %v1712_v57 }
 0x25f   :  { %v1689_v0 = vrot.slane %v1688_v61, 1  ;;  %v1720_v1 = vadd.f32 %v1719_v34, %v1718_v59 }
 0x260   :  { %v1684_v3 = vadd.f32 %v1683_v62, %v1682_v60  ;;  %v1715_v4 = vrot.slane %v1714_v63, 1 }
 0x261   :  { %v1690_v8 = vadd.f32 %v1689_v0, %v1688_v61  ;;  %v1721_v9 = vrot.slane %v1720_v1, 1  ;;  %v1664_v61 = vld [vmem:[#allocation7] sm:$0xf] }
 0x262   :  { %v1693_v10 = vmul.f32 0.125, %v1684_v3  ;;  %v1716_v11 = vadd.f32 %v1715_v4, %v1714_v63 }
 0x263   :  { %v1694_v12 = vmul.f32 0.125, %v1690_v8  ;;  %v1722_v14 = vadd.f32 %v1721_v9, %v1720_v1 }
 0x264   :  { %v1725_v15 = vmul.f32 0.125, %v1716_v11  ;;  %v1729_v16 = vmul.f32 %v1693_v10, %v1693_v10 }
 0x265   :  { %v1726_v17 = vmul.f32 0.125, %v1722_v14  ;;  %v1730_v18 = vmul.f32 %v1694_v12, %v1694_v12 }
 0x266   :  { %v1733_v19 = vsub.f32 %v1725_v15, %v1729_v16 }
 0x267   :  { %v1734_v20 = vsub.f32 %v1726_v17, %v1730_v18  ;;  %v3355_v18 = vld [vmem:[#allocation8 + $0x100] ss:$8 sps:$4 sm:$0xff]  }
 0x268   :  { %v1737_v21 = vadd.f32 1e-05, %v1733_v19 }
 0x269   :  { %v1738_v22 = vadd.f32 1e-05, %v1734_v20  ;;  %v3360_v20 = vld [vmem:[#allocation8 + $0x114] ss:$8 sps:$4 sm:$0xff]  }
 0x26a   :  { %3423 = vrsqrt.f32 %v1737_v21 }
 0x26b   :  { %3425 = vrsqrt.f32 %v1738_v22  ;;  %v3358_v22 = vld [vmem:[#allocation8 + $0x110] ss:$8 sps:$4 sm:$0xff]  }
 0x274   :  { %v3424_v30 = vpop.eup %3423 }
 0x275   :  { %v3426_v32 = vpop.eup %3425 }
 0x276   :  { %v1748_v33 = vcombine.low %v3424_v30, %v3426_v32  ;;  %v3367_v30 = vld [vmem:[#allocation8 + $0x140] ss:$8 sps:$4 sm:$0xff]   ;;  %v3372_v32 = vld [vmem:[#allocation8 + $0x154] ss:$8 sps:$4 sm:$0xff]  }
 0x278   :  { %v1762_v36 = vrot.slane %v1748_v33, %v3855_v31  ;;  %v3370_v33 = vld [vmem:[#allocation8 + $0x150] ss:$8 sps:$4 sm:$0xff]  }
 0x27a   :  { %v1763_v37 = vcombine.low %v1755_v35, %v1762_v36  ;;  %v3375_v35 = vld [vmem:[#allocation8 + $0x164] ss:$8 sps:$4 sm:$0xff]   ;;  %v3373_v36 = vld [vmem:[#allocation8 + $0x160] ss:$8 sps:$4 sm:$0xff]  }
 0x27c   :  { %v1770_v40 = vrot.slane %v1763_v37, %v3855_v31  ;;  %v3378_v37 = vld [vmem:[#allocation8 + $0x174] ss:$8 sps:$4 sm:$0xff]  }
 0x27e   :  { %v1772_v46 = vmul.f32 %v1770_v40, %v1663_v38  ;;  %v3376_v38 = vld [vmem:[#allocation8 + $0x170] ss:$8 sps:$4 sm:$0xff]   ;;  %v3379_v40 = vld [vmem:[#allocation8 + $0x180] ss:$8 sps:$4 sm:$0xff]  }
 0x280   :  { %v1785_v47 = vrot.slane %v1772_v46, %v1784_v39  ;;  %v1789_v49 = vrot.slane %v1772_v46, %v1788_v41  ;;  %v1777_v6 = vrot.slane %v1772_v46, %v3866_v43  ;;  %v1781_v27 = vrot.slane %v1772_v46, %v3868_v45  ;;  %v3382_v46 = vld [vmem:[#allocation8 + $0x190] ss:$8 sps:$4 sm:$0xff]  }
 0x282   :  { %v1796_v28 = vmul.f32 %v1785_v47, %v1693_v10  ;;  %v1797_v50 = vmul.f32 %v1789_v49, %v1694_v12  ;;  %v1831_v52 = vmul.f32 %v3845_v44, %v1789_v49  ;;  %v1794_v54 = vmul.f32 %v1777_v6, %v3827_v2  ;;  %v1665_v2 = vld [vmem:[%s3931_s9] sm:$0xff] }
 0x283   :  { %v1795_v48 = vmul.f32 %v1781_v27, %v3829_v5  ;;  %v1829_v55 = vmul.f32 %v3813_v13, %v1781_v27  ;;  %v1828_v56 = vmul.f32 %v3811_v51, %v1777_v6  ;;  %v1830_v53 = vmul.f32 %v3842_v42, %v1785_v47  ;;  %v3887_v51 = vld [vmem:[%s3931_s9 + $0x8] sm:$0xff]  ;;  %v3390_v6 = vld [vmem:[#allocation8 + $0x1b4] ss:$8 sps:$4 sm:$0xff]   ;;  %v3388_v27 = vld [vmem:[#allocation8 + $0x1b0] ss:$8 sps:$4 sm:$0xff]  }
 0x284   :  { %v1803_v57 = vcombine.low %v1796_v28, %v1797_v50  ;;  %v1861_v63 = vunpack.c.l.bf16 %v1665_v2  ;;  %v1862_v0 = vunpack.c.h.bf16 %v1665_v2  ;;  %v1864_v1 = vunpack.c.h.bf16 %v3887_v51  ;;  %v3387_v47 = vld [vmem:[#allocation8 + $0x1a4] ss:$8 sps:$4 sm:$0xff]   ;;  %v3385_v49 = vld [vmem:[#allocation8 + $0x1a0] ss:$8 sps:$4 sm:$0xff]  }
 0x285   :  { %v1802_v58 = vcombine.low %v1794_v54, %v1795_v48  ;;  %v3393_v28 = vld [vmem:[#allocation8 + $0x1c4] ss:$8 sps:$4 sm:$0xff]   ;;  %v3391_v50 = vld [vmem:[#allocation8 + $0x1c0] ss:$8 sps:$4 sm:$0xff]   ;;  %v3394_v54 = vld [vmem:[#allocation8 + $0x1d0] ss:$8 sps:$4 sm:$0xff]  }
 0x286   :  { %v1817_v59 = vrot.slane %v1803_v57, %v3855_v31  ;;  %v3399_v48 = vld [vmem:[#allocation8 + $0x1e4] ss:$8 sps:$4 sm:$0xff]  }
 0x287   :  { %v1810_v60 = vrot.slane %v1802_v58, %v3855_v31  ;;  %v3400_v58 = vld [vmem:[#allocation8 + $0x1f0] ss:$8 sps:$4 sm:$0xff]  }
 0x288   :  { %v3406_v2 = vld [vmem:[#allocation11 + $0x8] sm:$0xff]  }
 0x289   :  { %v1818_v7 = vcombine.low %v1810_v60, %v1817_v59 }
 0x28b   :  { %v1825_v44 = vrot.slane %v1818_v7, %v3855_v31  ;;  %v3403_v7 = vld [vmem:[#allocation11 + $0x40] sm:$0xff]  }
 0x28c   :  { %2944 = vmatprep.subr.bf16.mxu1 %v3403_v7 }
 0x28d   :  { %v1827_v5 = vsub.f32 %v1664_v61, %v1825_v44  ;;  %v3404_v61 = vld [vmem:[#allocation11] sm:$0xff]   ;;  %v3405_v44 = vld [vmem:[#allocation11 + $0x48] sm:$0xff]  }
 0x28e   :  { %2945 = vmatpush3.bf16.msra.mxu1 %v3404_v61 }
 0x28f   :  { %v1840_v13 = vrot.slane %v1827_v5, %v3868_v45  ;;  %v1836_v42 = vrot.slane %v1827_v5, %v3866_v43  ;;  %v1848_v34 = vrot.slane %v1827_v5, %v1788_v41  ;;  %v1844_v62 = vrot.slane %v1827_v5, %v1784_v39  ;;  %v3381_v39 = vld [vmem:[#allocation8 + $0x184] ss:$8 sps:$4 sm:$0xff]   ;;  %v3384_v41 = vld [vmem:[#allocation8 + $0x194] ss:$8 sps:$4 sm:$0xff]   ;;  %2946 = vmatprep.subr.bf16.mxu1 %v3405_v44 }
 0x290   :  { %v3407_v5 = vld [vmem:[#allocation11 + $0x50] sm:$0xff]  }
 0x291   :  { %v1854_v3 = vadd.f32 %v1840_v13, %v1829_v55  ;;  %v1853_v4 = vadd.f32 %v1836_v42, %v1828_v56  ;;  %v1856_v8 = vadd.f32 %v1848_v34, %v1831_v52  ;;  %v3892_v9 = vadd.f32 %v1844_v62, %v1830_v53  ;;  %v3396_v52 = vld [vmem:[#allocation8 + $0x1d4] ss:$8 sps:$4 sm:$0xff]   ;;  %v3397_v55 = vld [vmem:[#allocation8 + $0x1e0] ss:$8 sps:$4 sm:$0xff]  }
 0x292   :  { %v1863_v56 = vunpack.c.l.bf16 %v3887_v51  ;;  %v3402_v53 = vld [vmem:[#allocation8 + $0x1f4] ss:$8 sps:$4 sm:$0xff]   ;;  %2947 = vmatpush3.bf16.msra.mxu1 %v3406_v2  ;;  %v3411_v34 = vld [vmem:[#allocation11 + $0x60] sm:$0xff]  }
 0x293   :  { %v1858_v10 = vmax.f32 %v1854_v3, 0.0  ;;  %v1857_v11 = vmax.f32 %v1853_v4, 0.0  ;;  %v1860_v12 = vmax.f32 %v1856_v8, 0.0  ;;  %v1859_v57 = vmax.f32 %v3892_v9, 0.0  ;;  %v3408_v51 = vld [vmem:[#allocation11 + $0x10] sm:$0xff]   ;;  %2948 = vmatprep.subr.bf16.mxu1 %v3407_v5  ;;  %v3409_v13 = vld [vmem:[#allocation11 + $0x58] sm:$0xff]  }
 0x294   :  { %v3410_v42 = vld [vmem:[#allocation11 + $0x18] sm:$0xff]   ;;  %v3412_v62 = vld [vmem:[#allocation11 + $0x20] sm:$0xff]   ;;  %v3416_v3 = vld [vmem:[#allocation11 + $0x30] sm:$0xff]  }
 0x295   :  { %v1866_v14 = vmul.f32 %v1862_v0, %v1858_v10  ;;  %v1865_v15 = vmul.f32 %v1861_v63, %v1857_v11  ;;  %v1868_v16 = vmul.f32 %v1864_v1, %v1860_v12  ;;  %v1867_v59 = vmul.f32 %v1863_v56, %v1859_v57  ;;  %v3413_v63 = vld [vmem:[#allocation11 + $0x68] sm:$0xff]   ;;  %v3415_v1 = vld [vmem:[#allocation11 + $0x70] sm:$0xff]   ;;  %v3417_v4 = vld [vmem:[#allocation11 + $0x78] sm:$0xff]  }
 0x296   :  { %2949 = vmatpush3.bf16.msra.mxu1 %v3408_v51  ;;  %v3414_v0 = vld [vmem:[#allocation11 + $0x28] sm:$0xff]   ;;  %v3418_v8 = vld [vmem:[#allocation11 + $0x38] sm:$0xff]  }
 0x297   :  { %v1870_v17 = vpack.c.bf16 %v1866_v14, %v1866_v14  ;;  %v1869_v19 = vpack.c.bf16 %v1865_v15, %v1865_v15  ;;  %v1872_v21 = vpack.c.bf16 %v1868_v16, %v1868_v16  ;;  %v1871_v60 = vpack.c.bf16 %v1867_v59, %v1867_v59  ;;  %2950 = vmatprep.subr.bf16.mxu1 %v3409_v13 }
 0x299   :  { %2289 = vmatprep.mubr.bf16.mxu0 %v1870_v17 }
 0x29a   :  { %2290 = vmatmul.mubr.bf16.vlgmr.msra.gmra.mrb[8].mxu0 %v1869_v19  ;;  %2951 = vmatpush3.bf16.msra.mxu1 %v3410_v42 }
 0x29b   :  { %2299 = vmatpush1.bf16.msra.mxu0 %v3355_v18  ;;  %2330 = vmatprep.mubr.bf16.mxu0 %v1872_v21 }
 0x29c   :  { %2300 = vmatprep.subr.bf16.mxu0 %v3360_v20  ;;  %2952 = vmatprep.subr.bf16.mxu1 %v3411_v34 }
 0x29e   :  { %2953 = vmatpush3.bf16.msra.mxu1 %v3412_v62 }
 0x29f   :  { %2301 = vmatpush1.bf16.msra.mxu0 %v3358_v22  ;;  %2954 = vmatprep.subr.bf16.mxu1 %v3413_v63  ;;  %v2340_v63 = vld [vmem:[#allocation10] sm:$0x3] }
 0x2a0   :  { %2302 = vmatprep.subr.bf16.mxu0 %v3363_v23 }
 0x2a2   :  { %2955 = vmatpush3.bf16.msra.mxu1 %v3414_v0 }
 0x2a3   :  { %2303 = vmatpush1.bf16.msra.mxu0 %v3361_v24  ;;  %2956 = vmatprep.subr.bf16.mxu1 %v3415_v1 }
 0x2a4   :  { %2304 = vmatprep.subr.bf16.mxu0 %v3366_v25 }
 0x2a6   :  { %2957 = vmatpush3.bf16.msra.mxu1 %v3416_v3  ;;  %v2341_v3 = vld [vmem:[%s3932_s10] sm:$0xff]  ;;  %s3636_s10 = smov [#allocation14]  }
 0x2a7   :  { %2305 = vmatpush1.bf16.msra.mxu0 %v3364_v26  ;;  %2958 = vmatprep.subr.bf16.mxu1 %v3417_v4  ;;  %s2646_s27 = sshll.u32 %s3636_s10, 4  ;;  %s2647_s27 = int_to_ptr.vmem [resolvable:$true] %s2646_s27 }
 0x2a8   :  { %2306 = vmatprep.subr.bf16.mxu0 %v3369_v29  ;;  %s3589_s28 = scalar_lea.vmem %s2647_s27, 128  ;;  %p3594_p1 = scmp.lt.s32.totalorder %s2647_s27, %s2647_s27 }
 0x2a9   :  { %p3590_p0 = scmp.ne.s32.totalorder %s2647_s27, %s3589_s28  ;;  %p3595_p2 = scmp.lt.s32.totalorder %s3589_s28, %s3589_s28 }
 0x2aa   :  { %2959 = vmatpush3.bf16.msra.mxu1 %v3418_v8 }
 0x2ab   :  { %2307 = vmatpush1.bf16.msra.mxu0 %v3367_v30  ;;  %p3596_p3 = por %p3595_p2, %p3594_p1 }
 0x2ac   :  { %2308 = vmatprep.subr.bf16.mxu0 %v3372_v32 }
 0x2ad   :  { %p3597_p4 = pnand %p3596_p3, %p3590_p0 }
 0x2af   :  { %2309 = vmatpush1.bf16.msra.mxu0 %v3370_v33 }
 0x2b0   :  { %2310 = vmatprep.subr.bf16.mxu0 %v3375_v35 }
 0x2b3   :  { %2311 = vmatpush1.bf16.msra.mxu0 %v3373_v36 }
 0x2b4   :  { %2312 = vmatprep.subr.bf16.mxu0 %v3378_v37 }
 0x2b7   :  { %2313 = vmatpush1.bf16.msra.mxu0 %v3376_v38 }
 0x2b8   :  { %2314 = vmatprep.subr.bf16.mxu0 %v3381_v39 }
 0x2bb   :  { %2315 = vmatpush1.bf16.msra.mxu0 %v3379_v40 }
 0x2bc   :  { %2316 = vmatprep.subr.bf16.mxu0 %v3384_v41 }
 0x2bf   :  { %2317 = vmatpush1.bf16.msra.mxu0 %v3382_v46 }
 0x2c0   :  { %2318 = vmatprep.subr.bf16.mxu0 %v3387_v47 }
 0x2c3   :  { %2319 = vmatpush1.bf16.msra.mxu0 %v3385_v49 }
 0x2c4   :  { %2320 = vmatprep.subr.bf16.mxu0 %v3390_v6 }
 0x2c7   :  { %2321 = vmatpush1.bf16.msra.mxu0 %v3388_v27 }
 0x2c8   :  { %2322 = vmatprep.subr.bf16.mxu0 %v3393_v28 }
 0x2cb   :  { %2323 = vmatpush1.bf16.msra.mxu0 %v3391_v50 }
 0x2cc   :  { %2324 = vmatprep.subr.bf16.mxu0 %v3396_v52 }
 0x2cf   :  { %2325 = vmatpush1.bf16.msra.mxu0 %v3394_v54 }
 0x2d0   :  { %2326 = vmatprep.subr.bf16.mxu0 %v3399_v48 }
 0x2d3   :  { %2327 = vmatpush1.bf16.msra.mxu0 %v3397_v55 }
 0x2d4   :  { %2328 = vmatprep.subr.bf16.mxu0 %v3402_v53 }
 0x2d7   :  { %2329 = vmatpush1.bf16.msra.mxu0 %v3400_v58 }
 0x2da   :  { %2331 = vmatmul.mubr.bf16.vlgmr.msra.gmra.mrb[8].mxu0 %v1871_v60  ;;  %v2339_v60 = vld [vmem:[%s3927_s5] sm:$0x3] }
 0x3ad   :  { %v2332_v9 = vpop.f32.mrb[8].mxu0 }
 0x3ae   :  { %v2342_v10 = vrot.slane %v2332_v9, 4  ;;  %v2356_v11 = vmul.f32 %v2332_v9, %v2332_v9  ;;  %v2334_v12 = vpop.f32.mrb[9].mxu0 }
 0x3af   :  { %v2348_v14 = vrot.slane %v2334_v12, 4  ;;  %v2357_v15 = vmul.f32 %v2334_v12, %v2334_v12  ;;  %v2336_v16 = vpop.f32.mrb[10].mxu0 }
 0x3b0   :  { %v2343_v17 = vadd.f32 %v2342_v10, %v2332_v9  ;;  %v2358_v18 = vrot.slane %v2356_v11, 4  ;;  %v2337_v19 = vpop.f32.mrb[11].mxu0 }
 0x3b1   :  { %v2349_v20 = vadd.f32 %v2348_v14, %v2334_v12  ;;  %v2364_v21 = vrot.slane %v2357_v15, 4  ;;  %v2449_v14 = vunpack.c.h.bf16 %v2341_v3 }
 0x3b2   :  { %v2344_v22 = vrot.slane %v2343_v17, 2  ;;  %v2359_v23 = vadd.f32 %v2358_v18, %v2356_v11  ;;  %v2448_v11 = vunpack.c.l.bf16 %v2341_v3 }
 0x3b3   :  { %v2350_v24 = vrot.slane %v2349_v20, 2  ;;  %v2365_v25 = vadd.f32 %v2364_v21, %v2357_v15  ;;  %v2927_v21 = vld [vmem:[#allocation13] ss:$0 sm:$0xff] }
 0x3b4   :  { %v2345_v26 = vadd.f32 %v2344_v22, %v2343_v17  ;;  %v2360_v29 = vrot.slane %v2359_v23, 2 }
 0x3b5   :  { %v2351_v30 = vadd.f32 %v2350_v24, %v2349_v20  ;;  %v2366_v32 = vrot.slane %v2365_v25, 2 }
 0x3b6   :  { %v2346_v33 = vrot.slane %v2345_v26, 1  ;;  %v2361_v35 = vadd.f32 %v2360_v29, %v2359_v23 }
 0x3b7   :  { %v2352_v36 = vrot.slane %v2351_v30, 1  ;;  %v2367_v37 = vadd.f32 %v2366_v32, %v2365_v25 }
 0x3b8   :  { %v2347_v38 = vadd.f32 %v2346_v33, %v2345_v26  ;;  %v2362_v39 = vrot.slane %v2361_v35, 1 }
 0x3b9   :  { %v2353_v40 = vadd.f32 %v2352_v36, %v2351_v30  ;;  %v2368_v41 = vrot.slane %v2367_v37, 1 }
 0x3ba   :  { %v2354_v46 = vmul.f32 0.125, %v2347_v38  ;;  %v2363_v47 = vadd.f32 %v2362_v39, %v2361_v35 }
 0x3bb   :  { %v2355_v49 = vmul.f32 0.125, %v2353_v40  ;;  %v2369_v6 = vadd.f32 %v2368_v41, %v2367_v37 }
 0x3bc   :  { %v2370_v27 = vmul.f32 0.125, %v2363_v47  ;;  %v2372_v28 = vmul.f32 %v2354_v46, %v2354_v46 }
 0x3bd   :  { %v2371_v50 = vmul.f32 0.125, %v2369_v6  ;;  %v2373_v52 = vmul.f32 %v2355_v49, %v2355_v49 }
 0x3be   :  { %v2374_v54 = vsub.f32 %v2370_v27, %v2372_v28 }
 0x3bf   :  { %v2375_v48 = vsub.f32 %v2371_v50, %v2373_v52 }
 0x3c0   :  { %v2376_v55 = vadd.f32 1e-05, %v2374_v54 }
 0x3c1   :  { %v2377_v56 = vadd.f32 1e-05, %v2375_v48 }
 0x3c2   :  { %3427 = vrsqrt.f32 %v2376_v55 }
 0x3c3   :  { %3429 = vrsqrt.f32 %v2377_v56 }
 0x3cc   :  { %v3428_v53 = vpop.eup %3427 }
 0x3cd   :  { %v3430_v57 = vpop.eup %3429 }
 0x3ce   :  { %v2382_v58 = vcombine.low %v3428_v53, %v3430_v57 }
 0x3d0   :  { %v2389_v59 = vrot.slane %v2382_v58, %v3855_v31 }
 0x3d2   :  { %v2396_v7 = vrot.slane %v2389_v59, %v3855_v31 }
 0x3d4   :  { %v2398_v61 = vmul.f32 %v2396_v7, %v2339_v60 }
 0x3d6   :  { %v2403_v44 = vrot.slane %v2398_v61, %v3866_v43  ;;  %v2407_v2 = vrot.slane %v2398_v61, %v3868_v45 }
 0x3d8   :  { %v2410_v5 = vmul.f32 %v2403_v44, %v2354_v46  ;;  %v2411_v51 = vmul.f32 %v2407_v2, %v2355_v49  ;;  %v2432_v13 = vmul.f32 %v2407_v2, %v2334_v12  ;;  %v2431_v42 = vmul.f32 %v2403_v44, %v2332_v9 }
 0x3da   :  { %v2414_v34 = vcombine.low %v2410_v5, %v2411_v51 }
 0x3dc   :  { %v2421_v62 = vrot.slane %v2414_v34, %v3855_v31 }
 0x3de   :  { %v2428_v0 = vrot.slane %v2421_v62, %v3855_v31 }
 0x3e0   :  { %v2430_v1 = vsub.f32 %v2340_v63, %v2428_v0 }
 0x3e2   :  { %v2441_v4 = vrot.slane %v2430_v1, %v3868_v45  ;;  %v2437_v8 = vrot.slane %v2430_v1, %v3866_v43 }
 0x3e4   :  { %v2445_v10 = vadd.f32 %v2441_v4, %v2432_v13  ;;  %v2444_v12 = vadd.f32 %v2437_v8, %v2431_v42 }
 0x3e6   :  { %v2447_v9 = vmax.f32 %v2445_v10, 0.0  ;;  %v2446_v15 = vmax.f32 %v2444_v12, 0.0 }
 0x3e8   :  { %v2451_v16 = vmul.f32 %v2449_v14, %v2447_v9  ;;  %v2450_v17 = vmul.f32 %v2448_v11, %v2446_v15 }
 0x3ea   :  { %v2453_v18 = vpack.c.bf16 %v2451_v16, %v2451_v16  ;;  %v2452_v19 = vpack.c.bf16 %v2450_v17, %v2450_v17 }
 0x3ec   :  { %2621 = vmatprep.mubr.bf16.mxu1 %v2453_v18 }
 0x3ed   :  { %2622 = vmatmul.mubr.bf16.vlgmr.msra.gmra.mrb[8].mxu1 %v2452_v19 }
 0x4c0   :  { %v2960_v31 = vpop.f32.mrb[8].mxu1 }
 0x4c1   :  { %v2961_v20 = vpop.f32.mrb[9].mxu1 }
 0x4c2   :  { %v2962_v22 = vadd.f32 %v2961_v20, %v2960_v31  ;;  %v2963_v23 = vpop.f32.mrb[10].mxu1 }
 0x4c3   :  { %v2964_v45 = vpop.f32.mrb[11].mxu1 }
 0x4c4   :  { %v2624_v24 = vadd.f32 %v2962_v22, %v2927_v21 }
 0x4c6   :  { %2629 = vmax.xlane.f32.xlu0 %v2624_v24 }
 0x553   :  { %v2630_v43 = vpop.xlane.xlu0 %2629 }
 0x554   :  { %v2631_v25 = vsub.f32 %v2624_v24, %v2630_v43 }
 0x556   :  { %v2632_v26 = vmul.f32 1.442695, %v2631_v25 }
 0x558   :  { %3431 = vpow2.f32 %v2632_v26 }
 0x562   :  { %v3432_v29 = vpop.eup %3431 }
 0x563   :  { %2634 = vadd.xlane.f32.xlu0 %v3432_v29 }
 0x5f0   :  { %v2635_v30 = vpop.xlane.xlu0 %2634 }
 0x5f1   :  { %3433 = vlog2.f32 %v2635_v30 }
 0x5fb   :  { %v3434_v32 = vpop.eup %3433 }
 0x5fc   :  { %v2637_v33 = vmul.f32 0.6931472, %v3434_v32 }
 0x5fe   :  { %v2638_v35 = vsub.f32 %v2631_v25, %v2637_v33 }
 0x600   :  { %2639 = vst [vmem:[#allocation14] sm:$0xff] %v2638_v35 }
 0x601   :  { %3600 = shalt.err (!%p3597_p4)
}
 0x602   :  { %s3601_s26 = scalar_lea.hbm %s3933_s11, 128 }
 0x603   :  { %p3602_p5 = scmp.ne.s32.totalorder %s3933_s11, %s3601_s26  ;;  %p3605_p6 = scmp.lt.u32.totalorder %s3601_s26, %s3933_s11 }
 0x605   :  { %p3607_p7 = pnand %p3605_p6, %p3602_p5 }
 0x607   :  { %3610 = shalt.err (!%p3607_p7)
}
 0x608   :  { %2649 = dma.vmem_to_hbm [thread:$0]  %s2647_s27, 128, %s3933_s11, [#allocation4]  }
 0x609   :  { %3619 = dma.done.wait [#allocation4], 128  }
 0x60a   :  { %3620 = vsyncadd [#allocation4], 4294967168 }
 0x60b   :  { %2653 = vsyncpa [#allocation3], 1 }
 0x60c   :  { %2654 = vsyncpa [#allocation6], 1 }
 0x60d   :  { %2655 = vsyncpa [#allocation9], 1 }
 0x60e   :  { %2656 = vsyncpa [#allocation12], 1 }
 0x60f   :  { %2657 = vsyncpa [#allocation4], 1 }

</bundles_post_ra>
